<compile_context>
chip_gen: v5e
topology: v5e:2x2
jax: 0.10.0
libtpu: 0.0.40
codegen_flags: <defaults>
</compile_context>

<pallas_src>
import functools

import jax
import jax.numpy as jnp
from jax.experimental import pallas as pl
from jax.experimental.pallas import tpu as pltpu


def _round_up(n, m):
    return (n + m - 1) // m * m


def _orthogonal(key, rows, cols, gain=1.0, dtype=jnp.float32):
    """Deterministic orthogonal init matching torch.nn.init.orthogonal_ semantics."""
    n, m = max(rows, cols), min(rows, cols)
    a = jax.random.normal(key, (n, m), dtype=jnp.float32)
    q, r = jnp.linalg.qr(a)
    d = jnp.sign(jnp.diagonal(r))          # sign correction -> unique decomposition
    q = q * d[None, :]
    w = q if rows >= cols else q.T
    return (gain * w).astype(dtype)


# ---------------------------------------------------------------------------
# Kernel
# ---------------------------------------------------------------------------
def _critic_kernel(b3_ref, x_ref, w1_ref, b1_ref, w2_ref, b2_ref, w3_ref, o_ref):
    """One batch-tile grid step of the fused 3-layer critic MLP (all P particles).

    b3_ref : SMEM (P,) f32              scalar-prefetch per-particle output bias
    x_ref  : VMEM (TB, D_pad) bf16      batch tile
    w1_ref : VMEM (D_pad, P*H_pad) bf16 all particles' layer-1 weights, fused
    b1_ref : VMEM (1, P*H_pad) f32
    w2_ref : VMEM (P, H_pad, H_pad) bf16
    b2_ref : VMEM (P, 1, H_pad) f32
    w3_ref : VMEM (P, 1, H_pad) f32     last layer stored as a row per particle
    o_ref  : VMEM (P, TB) f32           batch along lanes -> lane-dense stores
    """
    P = o_ref.shape[0]
    h_pad = w2_ref.shape[-1]

    # Layer 1, fused across particles: one MXU matmul, f32 accumulate,
    # f32 bias + tanh on the VPU/EUP.
    h1_all = jnp.tanh(
        jnp.dot(x_ref[...], w1_ref[...], preferred_element_type=jnp.float32)
        + b1_ref[...]
    )                                                      # (TB, P*H_pad) f32

    for p in range(P):                                     # P is small & static
        h1 = h1_all[:, p * h_pad:(p + 1) * h_pad]          # lane-aligned slice
        # Layer 2: (TB, H) @ (H, H) per particle on the MXU.
        h2 = jnp.tanh(
            jnp.dot(h1.astype(w2_ref.dtype), w2_ref[p],
                    preferred_element_type=jnp.float32)
            + b2_ref[p]
        )
        # Layer 3 (H -> 1): VPU multiply + XLU lane reduce; result lands
        # batch-along-lanes for a dense 128-wide row store.
        v = jnp.sum(h2 * w3_ref[p], axis=-1) + b3_ref[p]   # (TB,) f32
        o_ref[p, :] = v


# ---------------------------------------------------------------------------
# Wrapper
# ---------------------------------------------------------------------------
@functools.partial(jax.jit, static_argnames=("batch_tile",))
def svpg_particle_critic(x, packed_params, batch_tile=None):
    """Fused forward for P SVPG particle critics. x: (B, in_dim) f32 -> (P, B, 1) f32."""
    w1, b1, w2, b2, w3, b3 = packed_params
    d_pad = w1.shape[0]
    P, h_pad, _ = w2.shape
    B, in_dim = x.shape

    if batch_tile is None:
        # Big enough to amortize the ~0.35us/step grid overhead, small enough
        # that the double-buffered x/out tiles plus the resident weight slab
        # stay well within any VMEM budget (incl. v7x's 64 MiB).
        batch_tile = max(128, min(512, _round_up(B, 128)))
    b_pad = _round_up(B, batch_tile)
    num_bt = b_pad // batch_tile

    # Zero-pad batch rows and feature lanes; padded rows are cropped below.
    xp = jnp.zeros((b_pad, d_pad), w1.dtype).at[:B, :in_dim].set(x.astype(w1.dtype))

    out = pl.pallas_call(
        _critic_kernel,
        out_shape=jax.ShapeDtypeStruct((P, b_pad), jnp.float32),
        grid_spec=pltpu.PrefetchScalarGridSpec(
            num_scalar_prefetch=1,                       # b3 -> SMEM
            grid=(num_bt,),                              # batch tiles only
            in_specs=[
                # x tile: one (TB, D_pad) block per grid step.
                pl.BlockSpec((batch_tile, d_pad), lambda bt, b3: (bt, 0)),
                # All weights/biases use constant index maps -> resident in
                # VMEM across the whole grid (DMA'd once per core).
                pl.BlockSpec((d_pad, P * h_pad), lambda bt, b3: (0, 0)),
                pl.BlockSpec((1, P * h_pad), lambda bt, b3: (0, 0)),
                pl.BlockSpec((P, h_pad, h_pad), lambda bt, b3: (0, 0, 0)),
                pl.BlockSpec((P, 1, h_pad), lambda bt, b3: (0, 0, 0)),
                pl.BlockSpec((P, 1, h_pad), lambda bt, b3: (0, 0, 0)),
            ],
            # One (P, TB) lane-dense output block per batch tile, written fully
            # within the step (all P rows) -> no cross-step residency needed.
            out_specs=pl.BlockSpec((P, batch_tile), lambda bt, b3: (0, bt)),
        ),
        compiler_params=pltpu.CompilerParams(
            # Batch tiles are independent -> "parallel" (megacore sharding).
            dimension_semantics=("parallel",),
        ),
    )(b3, xp, w1, b1, w2, b2, w3)

    # (P, B_pad) lane-dense result -> crop padding, present as (P, B, 1).
    return out[:, :B, None]


# ---------------------------------------------------------------------------
# Parameter construction / packing
# ---------------------------------------------------------------------------
def make_single_critic_params(key, input_dim, hidden_dim, dtype=jnp.float32):
    """One particle's params in x @ W layout (transposed vs. torch's (out, in))."""
    k1, k2, k3, kb1, kb2, kb3 = jax.random.split(key, 6)
    w1 = _orthogonal(k1, hidden_dim, input_dim, dtype=dtype).T     # (in, H)
    w2 = _orthogonal(k2, hidden_dim, hidden_dim, dtype=dtype).T    # (H, H)
    w3 = _orthogonal(k3, 1, hidden_dim, dtype=dtype).T             # (H, 1)
    # orthogonal_init zeroes the biases; use small non-zero biases here so the
    # kernel's bias plumbing (VMEM rows + SMEM scalar) is actually exercised.
    b1 = 0.1 * jax.random.normal(kb1, (hidden_dim,), dtype)
    b2 = 0.1 * jax.random.normal(kb2, (hidden_dim,), dtype)
    b3 = 0.1 * jax.random.normal(kb3, (1,), dtype)
    return w1, b1, w2, b2, w3, b3


def pack_params(particle_params, lane=128, mxu_dtype=jnp.bfloat16):
    """Zero-pad feature dims to `lane`, fuse layer-1 across particles, stack the rest."""
    P = len(particle_params)
    in_dim, hidden = particle_params[0][0].shape
    d_pad = _round_up(in_dim, lane)
    h_pad = _round_up(hidden, lane)

    w1 = jnp.zeros((d_pad, P * h_pad), jnp.float32)      # fused layer-1 weights
    b1 = jnp.zeros((1, P * h_pad), jnp.float32)
    w2 = jnp.zeros((P, h_pad, h_pad), jnp.float32)
    b2 = jnp.zeros((P, 1, h_pad), jnp.float32)
    w3 = jnp.zeros((P, 1, h_pad), jnp.float32)           # last layer as a row
    b3 = jnp.zeros((P,), jnp.float32)
    for i, (w1_i, b1_i, w2_i, b2_i, w3_i, b3_i) in enumerate(particle_params):
        c0 = i * h_pad
        w1 = w1.at[:in_dim, c0:c0 + hidden].set(w1_i)
        b1 = b1.at[0, c0:c0 + hidden].set(b1_i.reshape(-1))
        w2 = w2.at[i, :hidden, :hidden].set(w2_i)
        b2 = b2.at[i, 0, :hidden].set(b2_i.reshape(-1))
        w3 = w3.at[i, 0, :hidden].set(w3_i.reshape(-1))
        b3 = b3.at[i].set(b3_i.reshape(()))
    return (w1.astype(mxu_dtype), b1, w2.astype(mxu_dtype), b2, w3, b3)


# ---------------------------------------------------------------------------
# Pure-JAX reference (mirrors the kernel's precision choices)
# ---------------------------------------------------------------------------
def reference_forward(x, particle_params, mxu_dtype=jnp.bfloat16):
    outs = []
    for w1, b1, w2, b2, w3, b3 in particle_params:
        h1 = jnp.tanh(
            jnp.dot(x.astype(mxu_dtype), w1.astype(mxu_dtype),
                    preferred_element_type=jnp.float32) + b1)
        h2 = jnp.tanh(
            jnp.dot(h1.astype(mxu_dtype), w2.astype(mxu_dtype),
                    preferred_element_type=jnp.float32) + b2)
        y = jnp.dot(h2, w3, precision=jax.lax.Precision.HIGHEST) + b3
        outs.append(y)
    return jnp.stack(outs)     # (P, B, 1)


if __name__ == "__main__":
    input_dim, hidden_dim, batch, n_particles = 16, 32, 8, 4

    key = jax.random.PRNGKey(0)
    kx, kp = jax.random.split(key)
    x = jax.random.normal(kx, (batch, input_dim), dtype=jnp.float32)
    particle_params = [
        make_single_critic_params(k, input_dim, hidden_dim)
        for k in jax.random.split(kp, n_particles)
    ]
    packed = pack_params(particle_params, mxu_dtype=jnp.bfloat16)

    out = svpg_particle_critic(x, packed)
    out = jax.block_until_ready(out)

    ref = reference_forward(x, particle_params, mxu_dtype=jnp.bfloat16)
    assert out.shape == (n_particles, batch, 1), out.shape
    err = float(jnp.max(jnp.abs(out - ref)))
    assert err < 2e-3, f"mismatch vs reference: max abs err = {err}"

    print("KERNEL_OK")
</pallas_src>

<mosaic_0001>
module attributes {stable_mosaic.version = 11 : i64} {
  func.func @_critic_kernel(%arg0: i32, %arg1: memref<4xf32, #tpu.memory_space<smem>>, %arg2: memref<128x128xbf16, #tpu.memory_space<vmem>>, %arg3: memref<128x512xbf16, #tpu.memory_space<vmem>>, %arg4: memref<1x512xf32, #tpu.memory_space<vmem>>, %arg5: memref<4x128x128xbf16, #tpu.memory_space<vmem>>, %arg6: memref<4x1x128xf32, #tpu.memory_space<vmem>>, %arg7: memref<4x1x128xf32, #tpu.memory_space<vmem>>, %arg8: memref<4x128xf32, #tpu.memory_space<vmem>>) attributes {dimension_semantics = [#tpu.dimension_semantics<parallel>], iteration_bounds = array<i64: 1>, scalar_prefetch = 1 : i64, scratch_operands = 0 : i64, tpu.core_type = #tpu.core_type<tc>, window_params = [{transform_indices = @transform_0, window_bounds = array<i64: 128, 128>}, {pipeline_mode = #tpu.pipeline_mode<synchronous>, transform_indices = @transform_1, window_bounds = array<i64: 128, 512>}, {pipeline_mode = #tpu.pipeline_mode<synchronous>, transform_indices = @transform_2, window_bounds = array<i64: 1, 512>}, {pipeline_mode = #tpu.pipeline_mode<synchronous>, transform_indices = @transform_3, window_bounds = array<i64: 4, 128, 128>}, {pipeline_mode = #tpu.pipeline_mode<synchronous>, transform_indices = @transform_4, window_bounds = array<i64: 4, 1, 128>}, {pipeline_mode = #tpu.pipeline_mode<synchronous>, transform_indices = @transform_5, window_bounds = array<i64: 4, 1, 128>}, {transform_indices = @transform_6, window_bounds = array<i64: 4, 128>}]} {
    %c0 = arith.constant 0 : index
    %c0_0 = arith.constant 0 : index
    %0 = vector.load %arg2[%c0, %c0_0] : memref<128x128xbf16, #tpu.memory_space<vmem>>, vector<128x128xbf16>
    %c0_1 = arith.constant 0 : index
    %c0_2 = arith.constant 0 : index
    %1 = vector.load %arg3[%c0_1, %c0_2] : memref<128x512xbf16, #tpu.memory_space<vmem>>, vector<128x512xbf16>
    %cst = arith.constant dense<0.000000e+00> : vector<128x512xf32>
    %2 = tpu.matmul %0, %1, %cst {dimension_numbers = #tpu.dot_dimension_numbers<[1], [0], [0], [1], [0, 0, 1, 1], [], []>} : vector<128x128xbf16>, vector<128x512xbf16>, vector<128x512xf32> -> vector<128x512xf32>
    %c0_3 = arith.constant 0 : index
    %c0_4 = arith.constant 0 : index
    %3 = vector.load %arg4[%c0_3, %c0_4] : memref<1x512xf32, #tpu.memory_space<vmem>>, vector<1x512xf32>
    %4 = vector.broadcast %3 : vector<1x512xf32> to vector<128x512xf32>
    %5 = arith.addf %2, %4 : vector<128x512xf32>
    %6 = math.tanh %5 : vector<128x512xf32>
    %7 = vector.extract_strided_slice %6 {offsets = [0, 0], sizes = [128, 128], strides = [1, 1]} : vector<128x512xf32> to vector<128x128xf32>
    %8 = arith.truncf %7 : vector<128x128xf32> to vector<128x128xbf16>
    %c0_5 = arith.constant 0 : index
    %c0_6 = arith.constant 0 : index
    %c0_7 = arith.constant 0 : index
    %9 = vector.load %arg5[%c0_5, %c0_6, %c0_7] : memref<4x128x128xbf16, #tpu.memory_space<vmem>>, vector<1x128x128xbf16>
    %10 = vector.shape_cast %9 : vector<1x128x128xbf16> to vector<128x128xbf16>
    %cst_8 = arith.constant dense<0.000000e+00> : vector<128x128xf32>
    %11 = tpu.matmul %8, %10, %cst_8 {dimension_numbers = #tpu.dot_dimension_numbers<[1], [0], [0], [1], [0, 0, 1, 1], [], []>} : vector<128x128xbf16>, vector<128x128xbf16>, vector<128x128xf32> -> vector<128x128xf32>
    %c0_9 = arith.constant 0 : index
    %c0_10 = arith.constant 0 : index
    %c0_11 = arith.constant 0 : index
    %12 = vector.load %arg6[%c0_9, %c0_10, %c0_11] : memref<4x1x128xf32, #tpu.memory_space<vmem>>, vector<1x1x128xf32>
    %13 = vector.shape_cast %12 : vector<1x1x128xf32> to vector<1x128xf32>
    %14 = vector.broadcast %13 : vector<1x128xf32> to vector<128x128xf32>
    %15 = arith.addf %11, %14 : vector<128x128xf32>
    %16 = math.tanh %15 : vector<128x128xf32>
    %c0_12 = arith.constant 0 : index
    %c0_13 = arith.constant 0 : index
    %c0_14 = arith.constant 0 : index
    %17 = vector.load %arg7[%c0_12, %c0_13, %c0_14] : memref<4x1x128xf32, #tpu.memory_space<vmem>>, vector<1x1x128xf32>
    %18 = vector.shape_cast %17 : vector<1x1x128xf32> to vector<1x128xf32>
    %19 = vector.broadcast %18 : vector<1x128xf32> to vector<128x128xf32>
    %20 = arith.mulf %16, %19 : vector<128x128xf32>
    %cst_15 = arith.constant dense<0.000000e+00> : vector<128xf32>
    %21 = vector.multi_reduction <add>, %20, %cst_15 [1] : vector<128x128xf32> to vector<128xf32>
    %c0_16 = arith.constant 0 : index
    %22 = memref.load %arg1[%c0_16] : memref<4xf32, #tpu.memory_space<smem>>
    %23 = vector.broadcast %22 : f32 to vector<128xf32>
    %24 = arith.addf %21, %23 : vector<128xf32>
    %c0_17 = arith.constant 0 : index
    %c0_18 = arith.constant 0 : index
    %25 = vector.load %arg8[%c0_17, %c0_18] : memref<4x128xf32, #tpu.memory_space<vmem>>, vector<1x128xf32>
    %26 = vector.shape_cast %25 : vector<1x128xf32> to vector<128xf32>
    %27 = vector.shape_cast %24 : vector<128xf32> to vector<1x128xf32>
    tpu.vector_store %arg8[%c0_17, %c0_18], %27 {strides = array<i32>} : memref<4x128xf32, #tpu.memory_space<vmem>>, vector<1x128xf32>,
    %28 = vector.extract_strided_slice %6 {offsets = [0, 128], sizes = [128, 128], strides = [1, 1]} : vector<128x512xf32> to vector<128x128xf32>
    %29 = arith.truncf %28 : vector<128x128xf32> to vector<128x128xbf16>
    %c1 = arith.constant 1 : index
    %c0_19 = arith.constant 0 : index
    %c0_20 = arith.constant 0 : index
    %30 = vector.load %arg5[%c1, %c0_19, %c0_20] : memref<4x128x128xbf16, #tpu.memory_space<vmem>>, vector<1x128x128xbf16>
    %31 = vector.shape_cast %30 : vector<1x128x128xbf16> to vector<128x128xbf16>
    %cst_21 = arith.constant dense<0.000000e+00> : vector<128x128xf32>
    %32 = tpu.matmul %29, %31, %cst_21 {dimension_numbers = #tpu.dot_dimension_numbers<[1], [0], [0], [1], [0, 0, 1, 1], [], []>} : vector<128x128xbf16>, vector<128x128xbf16>, vector<128x128xf32> -> vector<128x128xf32>
    %c1_22 = arith.constant 1 : index
    %c0_23 = arith.constant 0 : index
    %c0_24 = arith.constant 0 : index
    %33 = vector.load %arg6[%c1_22, %c0_23, %c0_24] : memref<4x1x128xf32, #tpu.memory_space<vmem>>, vector<1x1x128xf32>
    %34 = vector.shape_cast %33 : vector<1x1x128xf32> to vector<1x128xf32>
    %35 = vector.broadcast %34 : vector<1x128xf32> to vector<128x128xf32>
    %36 = arith.addf %32, %35 : vector<128x128xf32>
    %37 = math.tanh %36 : vector<128x128xf32>
    %c1_25 = arith.constant 1 : index
    %c0_26 = arith.constant 0 : index
    %c0_27 = arith.constant 0 : index
    %38 = vector.load %arg7[%c1_25, %c0_26, %c0_27] : memref<4x1x128xf32, #tpu.memory_space<vmem>>, vector<1x1x128xf32>
    %39 = vector.shape_cast %38 : vector<1x1x128xf32> to vector<1x128xf32>
    %40 = vector.broadcast %39 : vector<1x128xf32> to vector<128x128xf32>
    %41 = arith.mulf %37, %40 : vector<128x128xf32>
    %cst_28 = arith.constant dense<0.000000e+00> : vector<128xf32>
    %42 = vector.multi_reduction <add>, %41, %cst_28 [1] : vector<128x128xf32> to vector<128xf32>
    %c1_29 = arith.constant 1 : index
    %43 = memref.load %arg1[%c1_29] : memref<4xf32, #tpu.memory_space<smem>>
    %44 = vector.broadcast %43 : f32 to vector<128xf32>
    %45 = arith.addf %42, %44 : vector<128xf32>
    %c1_30 = arith.constant 1 : index
    %c0_31 = arith.constant 0 : index
    %46 = vector.load %arg8[%c1_30, %c0_31] : memref<4x128xf32, #tpu.memory_space<vmem>>, vector<1x128xf32>
    %47 = vector.shape_cast %46 : vector<1x128xf32> to vector<128xf32>
    %48 = vector.shape_cast %45 : vector<128xf32> to vector<1x128xf32>
    tpu.vector_store %arg8[%c1_30, %c0_31], %48 {strides = array<i32>} : memref<4x128xf32, #tpu.memory_space<vmem>>, vector<1x128xf32>,
    %49 = vector.extract_strided_slice %6 {offsets = [0, 256], sizes = [128, 128], strides = [1, 1]} : vector<128x512xf32> to vector<128x128xf32>
    %50 = arith.truncf %49 : vector<128x128xf32> to vector<128x128xbf16>
    %c2 = arith.constant 2 : index
    %c0_32 = arith.constant 0 : index
    %c0_33 = arith.constant 0 : index
    %51 = vector.load %arg5[%c2, %c0_32, %c0_33] : memref<4x128x128xbf16, #tpu.memory_space<vmem>>, vector<1x128x128xbf16>
    %52 = vector.shape_cast %51 : vector<1x128x128xbf16> to vector<128x128xbf16>
    %cst_34 = arith.constant dense<0.000000e+00> : vector<128x128xf32>
    %53 = tpu.matmul %50, %52, %cst_34 {dimension_numbers = #tpu.dot_dimension_numbers<[1], [0], [0], [1], [0, 0, 1, 1], [], []>} : vector<128x128xbf16>, vector<128x128xbf16>, vector<128x128xf32> -> vector<128x128xf32>
    %c2_35 = arith.constant 2 : index
    %c0_36 = arith.constant 0 : index
    %c0_37 = arith.constant 0 : index
    %54 = vector.load %arg6[%c2_35, %c0_36, %c0_37] : memref<4x1x128xf32, #tpu.memory_space<vmem>>, vector<1x1x128xf32>
    %55 = vector.shape_cast %54 : vector<1x1x128xf32> to vector<1x128xf32>
    %56 = vector.broadcast %55 : vector<1x128xf32> to vector<128x128xf32>
    %57 = arith.addf %53, %56 : vector<128x128xf32>
    %58 = math.tanh %57 : vector<128x128xf32>
    %c2_38 = arith.constant 2 : index
    %c0_39 = arith.constant 0 : index
    %c0_40 = arith.constant 0 : index
    %59 = vector.load %arg7[%c2_38, %c0_39, %c0_40] : memref<4x1x128xf32, #tpu.memory_space<vmem>>, vector<1x1x128xf32>
    %60 = vector.shape_cast %59 : vector<1x1x128xf32> to vector<1x128xf32>
    %61 = vector.broadcast %60 : vector<1x128xf32> to vector<128x128xf32>
    %62 = arith.mulf %58, %61 : vector<128x128xf32>
    %cst_41 = arith.constant dense<0.000000e+00> : vector<128xf32>
    %63 = vector.multi_reduction <add>, %62, %cst_41 [1] : vector<128x128xf32> to vector<128xf32>
    %c2_42 = arith.constant 2 : index
    %64 = memref.load %arg1[%c2_42] : memref<4xf32, #tpu.memory_space<smem>>
    %65 = vector.broadcast %64 : f32 to vector<128xf32>
    %66 = arith.addf %63, %65 : vector<128xf32>
    %c2_43 = arith.constant 2 : index
    %c0_44 = arith.constant 0 : index
    %67 = vector.load %arg8[%c2_43, %c0_44] : memref<4x128xf32, #tpu.memory_space<vmem>>, vector<1x128xf32>
    %68 = vector.shape_cast %67 : vector<1x128xf32> to vector<128xf32>
    %69 = vector.shape_cast %66 : vector<128xf32> to vector<1x128xf32>
    tpu.vector_store %arg8[%c2_43, %c0_44], %69 {strides = array<i32>} : memref<4x128xf32, #tpu.memory_space<vmem>>, vector<1x128xf32>,
    %70 = vector.extract_strided_slice %6 {offsets = [0, 384], sizes = [128, 128], strides = [1, 1]} : vector<128x512xf32> to vector<128x128xf32>
    %71 = arith.truncf %70 : vector<128x128xf32> to vector<128x128xbf16>
    %c3 = arith.constant 3 : index
    %c0_45 = arith.constant 0 : index
    %c0_46 = arith.constant 0 : index
    %72 = vector.load %arg5[%c3, %c0_45, %c0_46] : memref<4x128x128xbf16, #tpu.memory_space<vmem>>, vector<1x128x128xbf16>
    %73 = vector.shape_cast %72 : vector<1x128x128xbf16> to vector<128x128xbf16>
    %cst_47 = arith.constant dense<0.000000e+00> : vector<128x128xf32>
    %74 = tpu.matmul %71, %73, %cst_47 {dimension_numbers = #tpu.dot_dimension_numbers<[1], [0], [0], [1], [0, 0, 1, 1], [], []>} : vector<128x128xbf16>, vector<128x128xbf16>, vector<128x128xf32> -> vector<128x128xf32>
    %c3_48 = arith.constant 3 : index
    %c0_49 = arith.constant 0 : index
    %c0_50 = arith.constant 0 : index
    %75 = vector.load %arg6[%c3_48, %c0_49, %c0_50] : memref<4x1x128xf32, #tpu.memory_space<vmem>>, vector<1x1x128xf32>
    %76 = vector.shape_cast %75 : vector<1x1x128xf32> to vector<1x128xf32>
    %77 = vector.broadcast %76 : vector<1x128xf32> to vector<128x128xf32>
    %78 = arith.addf %74, %77 : vector<128x128xf32>
    %79 = math.tanh %78 : vector<128x128xf32>
    %c3_51 = arith.constant 3 : index
    %c0_52 = arith.constant 0 : index
    %c0_53 = arith.constant 0 : index
    %80 = vector.load %arg7[%c3_51, %c0_52, %c0_53] : memref<4x1x128xf32, #tpu.memory_space<vmem>>, vector<1x1x128xf32>
    %81 = vector.shape_cast %80 : vector<1x1x128xf32> to vector<1x128xf32>
    %82 = vector.broadcast %81 : vector<1x128xf32> to vector<128x128xf32>
    %83 = arith.mulf %79, %82 : vector<128x128xf32>
    %cst_54 = arith.constant dense<0.000000e+00> : vector<128xf32>
    %84 = vector.multi_reduction <add>, %83, %cst_54 [1] : vector<128x128xf32> to vector<128xf32>
    %c3_55 = arith.constant 3 : index
    %85 = memref.load %arg1[%c3_55] : memref<4xf32, #tpu.memory_space<smem>>
    %86 = vector.broadcast %85 : f32 to vector<128xf32>
    %87 = arith.addf %84, %86 : vector<128xf32>
    %c3_56 = arith.constant 3 : index
    %c0_57 = arith.constant 0 : index
    %88 = vector.load %arg8[%c3_56, %c0_57] : memref<4x128xf32, #tpu.memory_space<vmem>>, vector<1x128xf32>
    %89 = vector.shape_cast %88 : vector<1x128xf32> to vector<128xf32>
    %90 = vector.shape_cast %87 : vector<128xf32> to vector<1x128xf32>
    tpu.vector_store %arg8[%c3_56, %c0_57], %90 {strides = array<i32>} : memref<4x128xf32, #tpu.memory_space<vmem>>, vector<1x128xf32>,
    return
  }
  func.func @transform_0(%arg0: i32, %arg1: memref<4xf32, #tpu.memory_space<smem>>) -> (i32, i32) {
    %c0_i32 = arith.constant 0 : i32
    %c0_i32_0 = arith.constant 0 : i32
    return %arg0, %c0_i32 : i32, i32
  }
  func.func @transform_1(%arg0: i32, %arg1: memref<4xf32, #tpu.memory_space<smem>>) -> (i32, i32) {
    %c0_i32 = arith.constant 0 : i32
    %c0_i32_0 = arith.constant 0 : i32
    %c0_i32_1 = arith.constant 0 : i32
    return %c0_i32, %c0_i32_0 : i32, i32
  }
  func.func @transform_2(%arg0: i32, %arg1: memref<4xf32, #tpu.memory_space<smem>>) -> (i32, i32) {
    %c0_i32 = arith.constant 0 : i32
    %c0_i32_0 = arith.constant 0 : i32
    %c0_i32_1 = arith.constant 0 : i32
    return %c0_i32, %c0_i32_0 : i32, i32
  }
  func.func @transform_3(%arg0: i32, %arg1: memref<4xf32, #tpu.memory_space<smem>>) -> (i32, i32, i32) {
    %c0_i32 = arith.constant 0 : i32
    %c0_i32_0 = arith.constant 0 : i32
    %c0_i32_1 = arith.constant 0 : i32
    %c0_i32_2 = arith.constant 0 : i32
    return %c0_i32, %c0_i32_0, %c0_i32_1 : i32, i32, i32
  }
  func.func @transform_4(%arg0: i32, %arg1: memref<4xf32, #tpu.memory_space<smem>>) -> (i32, i32, i32) {
    %c0_i32 = arith.constant 0 : i32
    %c0_i32_0 = arith.constant 0 : i32
    %c0_i32_1 = arith.constant 0 : i32
    %c0_i32_2 = arith.constant 0 : i32
    return %c0_i32, %c0_i32_0, %c0_i32_1 : i32, i32, i32
  }
  func.func @transform_5(%arg0: i32, %arg1: memref<4xf32, #tpu.memory_space<smem>>) -> (i32, i32, i32) {
    %c0_i32 = arith.constant 0 : i32
    %c0_i32_0 = arith.constant 0 : i32
    %c0_i32_1 = arith.constant 0 : i32
    %c0_i32_2 = arith.constant 0 : i32
    return %c0_i32, %c0_i32_0, %c0_i32_1 : i32, i32, i32
  }
  func.func @transform_6(%arg0: i32, %arg1: memref<4xf32, #tpu.memory_space<smem>>) -> (i32, i32) {
    %c0_i32 = arith.constant 0 : i32
    %c0_i32_0 = arith.constant 0 : i32
    return %c0_i32, %arg0 : i32, i32
  }
}

</mosaic_0001>

<bundles_post_ra>
// kernel: svpg_particle_critic.1
= control target key start
LH: loop header
LB: loop body
LE: loop exit
PB: predicated region body
PF: predicated region fallthrough
CT: control target
= control target key end

     0   :  { %s2423_s27 = smov [#allocation3]   ;;  %s3014_s0 = inlined_call_operand.vmem [shape: f32[4], index: 0, kind: input, shape index: {}]   ;;  %s3015_s1 = inlined_call_operand.vmem [shape: bf16[128,128], index: 1, kind: input, shape index: {}]   ;;  %s3016_s2 = inlined_call_operand.hbm [shape: bf16[128,512], index: 2, kind: input, shape index: {}]   ;;  %s3017_s3 = inlined_call_operand.vmem [shape: f32[1,512], index: 3, kind: input, shape index: {}]   ;;  %s3018_s4 = inlined_call_operand.hbm [shape: bf16[4,128,128], index: 4, kind: input, shape index: {}]   ;;  %s3019_s5 = inlined_call_operand.vmem [shape: f32[4,1,128], index: 5, kind: input, shape index: {}]   ;;  %s3020_s6 = inlined_call_operand.vmem [shape: f32[4,1,128], index: 6, kind: input, shape index: {}]   ;;  %s3021_s7 = inlined_call_operand.hbm [shape: f32[4,128], index: 7, kind: output, shape index: {}]  }
   0x1   :  { %s13_s26 = sshll.u32 %s3014_s0, 4  ;;  %s14_s26 = int_to_ptr.vmem [resolvable:$true] %s13_s26 }
   0x2   :  { %16 = dma.vmem_to_smem %s14_s26, 16, %s2423_s27, [#allocation2] }
   0x3   :  { %2415 = dma.done.wait [#allocation2], 16 }
   0x4   :  { %2416 = vsyncadd [#allocation2], 4294967280 }
   0x5   :  { %19 = sfence }
   0x6   :  { %20 = vsyncpa [#allocation5], 0 }
   0x7   :  { %21 = vsyncpa [#allocation8], 0 }
   0x8   :  { %22 = vsyncpa [#allocation6], 0  ;;  %s29_s30 = sshll.u32 %s3016_s2, 4  ;;  %s2424_s8 = smov [#allocation4]   ;;  %s30_s30 = int_to_ptr.hbm [resolvable:$true] %s29_s30 }
   0x9   :  { %s31_s9 = sshll.u32 %s2424_s8, 4  ;;  %s44_s0 = sshll.u32 %s3018_s4, 4  ;;  %s32_s9 = int_to_ptr.vmem [resolvable:$true] %s31_s9  ;;  %s45_s0 = int_to_ptr.hbm [resolvable:$true] %s44_s0 }
   0xa   :  { %s2425_s12 = smov 256   ;;  %s2426_s13 = smov 16  }
   0xb   :  { %37 = dma.hbm_to_vmem [thread:$0]  %s30_s30, 4096, %s32_s9, [#allocation5], %s2425_s12, %s2425_s12, %s2426_s13  }
   0xc   :  { %s2427_s14 = smov [#allocation7]   ;;  %s2428_s16 = smov 64  }
   0xd   :  { %s46_s15 = sshll.u32 %s2427_s14, 4  ;;  %s2429_s17 = smov 4   ;;  %s47_s15 = int_to_ptr.vmem [resolvable:$true] %s46_s15 }
   0xe   :  { %52 = dma.hbm_to_vmem [thread:$0]  %s45_s0, 4096, %s47_s15, [#allocation8], %s2428_s16, %s2428_s16, %s2429_s17  }
   0xf   :  { %2417 = dma.done.wait [#allocation5], 4096  }
  0x10   :  { %2418 = vsyncadd [#allocation5], 4294963200 }
  0x11   :  { %2419 = dma.done.wait [#allocation8], 4096  }
  0x12   :  { %2420 = vsyncadd [#allocation8], 4294963200  ;;  %v1836_v0 = vld [vmem:[#allocation4 + $0xe0] sm:$0xf]  ;;  %v2025_v1 = vld [vmem:[#allocation4 + $0xec] sm:$0xf0] }
  0x13   :  { %v2023_v2 = vld [vmem:[#allocation4 + $0xe4] sm:$0xf]  ;;  %v1837_v3 = vor.u32 %v2025_v1, %v1836_v0  ;;  %v1838_v4 = vld [vmem:[#allocation4 + $0xf0] sm:$0xf0]  ;;  %v1844_v5 = vld [vmem:[#allocation4 + $0xe8] sm:$0xf] }
  0x14   :  { %v2026_v6 = vld [vmem:[#allocation4 + $0xf4] sm:$0xf0]  ;;  %v1841_v7 = vor.u32 %v2023_v2, %v1838_v4  ;;  %v2024_v9 = vld [vmem:[#allocation4 + $0xec] sm:$0xf]  ;;  %v1846_v10 = vld [vmem:[#allocation4 + $0xf8] sm:$0xf0] }
  0x15   :  { %v1845_v8 = vor.u32 %v2026_v6, %v1844_v5  ;;  %v1820_v11 = vld [vmem:[#allocation4 + $0xc0] sm:$0xf]  ;;  %331 = vmatpush.bf16.msra.mxu0 %v1837_v3  ;;  %v1849_v12 = vor.u32 %v2024_v9, %v1846_v10  ;;  %v2021_v13 = vld [vmem:[#allocation4 + $0xcc] sm:$0xf0]  ;;  %v2019_v14 = vld [vmem:[#allocation4 + $0xc4] sm:$0xf] }
  0x16   :  { %v1822_v15 = vld [vmem:[#allocation4 + $0xd0] sm:$0xf0]  ;;  %380 = vmatpush.bf16.msra.mxu1 %v1841_v7  ;;  %v1821_v16 = vor.u32 %v2021_v13, %v1820_v11  ;;  %v1828_v18 = vld [vmem:[#allocation4 + $0xc8] sm:$0xf]  ;;  %v2022_v19 = vld [vmem:[#allocation4 + $0xd4] sm:$0xf0] }
  0x17   :  { %429 = vmatpush.bf16.msra.mxu2 %v1845_v8  ;;  %v1825_v17 = vor.u32 %v2019_v14, %v1822_v15  ;;  %v2020_v20 = vld [vmem:[#allocation4 + $0xcc] sm:$0xf]  ;;  %478 = vmatpush.bf16.msra.mxu3 %v1849_v12  ;;  %v1829_v21 = vor.u32 %v2022_v19, %v1828_v18  ;;  %v1830_v22 = vld [vmem:[#allocation4 + $0xd8] sm:$0xf0]  ;;  %v1804_v23 = vld [vmem:[#allocation4 + $0xa0] sm:$0xf] }
  0x18   :  { %v2017_v24 = vld [vmem:[#allocation4 + $0xac] sm:$0xf0]  ;;  %v1833_v25 = vor.u32 %v2020_v20, %v1830_v22  ;;  %v2015_v26 = vld [vmem:[#allocation4 + $0xa4] sm:$0xf]  ;;  %v1806_v27 = vld [vmem:[#allocation4 + $0xb0] sm:$0xf0] }
  0x19   :  { %v1812_v28 = vld [vmem:[#allocation4 + $0xa8] sm:$0xf]  ;;  %332 = vmatpush.bf16.msra.mxu0 %v1821_v16  ;;  %v1805_v29 = vor.u32 %v2017_v24, %v1804_v23  ;;  %v2018_v30 = vld [vmem:[#allocation4 + $0xb4] sm:$0xf0]  ;;  %v2016_v31 = vld [vmem:[#allocation4 + $0xac] sm:$0xf]  ;;  %v1809_v33 = vor.u32 %v2015_v26, %v1806_v27 }
  0x1a   :  { %v1814_v32 = vld [vmem:[#allocation4 + $0xb8] sm:$0xf0]  ;;  %381 = vmatpush.bf16.msra.mxu1 %v1825_v17  ;;  %v1813_v34 = vor.u32 %v2018_v30, %v1812_v28  ;;  %v1788_v35 = vld [vmem:[#allocation4 + $0x80] sm:$0xf]  ;;  %v2013_v36 = vld [vmem:[#allocation4 + $0x8c] sm:$0xf0] }
  0x1b   :  { %430 = vmatpush.bf16.msra.mxu2 %v1829_v21  ;;  %v2011_v37 = vld [vmem:[#allocation4 + $0x84] sm:$0xf]  ;;  %479 = vmatpush.bf16.msra.mxu3 %v1833_v25  ;;  %v1817_v38 = vor.u32 %v2016_v31, %v1814_v32  ;;  %v1790_v39 = vld [vmem:[#allocation4 + $0x90] sm:$0xf0]  ;;  %v1796_v40 = vld [vmem:[#allocation4 + $0x88] sm:$0xf]  ;;  %v1789_v44 = vor.u32 %v2013_v36, %v1788_v35 }
  0x1c   :  { %v2014_v41 = vld [vmem:[#allocation4 + $0x94] sm:$0xf0]  ;;  %v2012_v42 = vld [vmem:[#allocation4 + $0x8c] sm:$0xf]  ;;  %v1798_v43 = vld [vmem:[#allocation4 + $0x98] sm:$0xf0]  ;;  %v1793_v45 = vor.u32 %v2011_v37, %v1790_v39 }
  0x1d   :  { %333 = vmatpush.bf16.msra.mxu0 %v1805_v29  ;;  %v1797_v46 = vor.u32 %v2014_v41, %v1796_v40  ;;  %v1772_v47 = vld [vmem:[#allocation4 + $0x60] sm:$0xf]  ;;  %v2009_v48 = vld [vmem:[#allocation4 + $0x6c] sm:$0xf0]  ;;  %v2007_v49 = vld [vmem:[#allocation4 + $0x64] sm:$0xf]  ;;  %v1801_v50 = vor.u32 %v2012_v42, %v1798_v43 }
  0x1e   :  { %382 = vmatpush.bf16.msra.mxu1 %v1809_v33  ;;  %v1774_v51 = vld [vmem:[#allocation4 + $0x70] sm:$0xf0]  ;;  %v1780_v52 = vld [vmem:[#allocation4 + $0x68] sm:$0xf]  ;;  %v2010_v53 = vld [vmem:[#allocation4 + $0x74] sm:$0xf0]  ;;  %v1773_v56 = vor.u32 %v2009_v48, %v1772_v47 }
  0x1f   :  { %431 = vmatpush.bf16.msra.mxu2 %v1813_v34  ;;  %480 = vmatpush.bf16.msra.mxu3 %v1817_v38  ;;  %v2008_v54 = vld [vmem:[#allocation4 + $0x6c] sm:$0xf]  ;;  %v1782_v55 = vld [vmem:[#allocation4 + $0x78] sm:$0xf0]  ;;  %v1777_v57 = vor.u32 %v2007_v49, %v1774_v51  ;;  %v1781_v58 = vor.u32 %v2010_v53, %v1780_v52  ;;  %v1756_v59 = vld [vmem:[#allocation4 + $0x40] sm:$0xf] }
  0x20   :  { %v2005_v60 = vld [vmem:[#allocation4 + $0x4c] sm:$0xf0]  ;;  %v2003_v61 = vld [vmem:[#allocation4 + $0x44] sm:$0xf]  ;;  %v1785_v62 = vor.u32 %v2008_v54, %v1782_v55  ;;  %v1758_v63 = vld [vmem:[#allocation4 + $0x50] sm:$0xf0] }
  0x21   :  { %334 = vmatpush.bf16.msra.mxu0 %v1789_v44  ;;  %v1764_v0 = vld [vmem:[#allocation4 + $0x48] sm:$0xf]  ;;  %v2006_v1 = vld [vmem:[#allocation4 + $0x54] sm:$0xf0]  ;;  %v2004_v2 = vld [vmem:[#allocation4 + $0x4c] sm:$0xf]  ;;  %v1757_v4 = vor.u32 %v2005_v60, %v1756_v59  ;;  %v1761_v6 = vor.u32 %v2003_v61, %v1758_v63 }
  0x22   :  { %383 = vmatpush.bf16.msra.mxu1 %v1793_v45  ;;  %v1766_v3 = vld [vmem:[#allocation4 + $0x58] sm:$0xf0]  ;;  %v1740_v5 = vld [vmem:[#allocation4 + $0x20] sm:$0xf]  ;;  %v1765_v7 = vor.u32 %v2006_v1, %v1764_v0  ;;  %v2001_v8 = vld [vmem:[#allocation4 + $0x2c] sm:$0xf0] }
  0x23   :  { %432 = vmatpush.bf16.msra.mxu2 %v1797_v46  ;;  %481 = vmatpush.bf16.msra.mxu3 %v1801_v50  ;;  %v1999_v9 = vld [vmem:[#allocation4 + $0x24] sm:$0xf]  ;;  %v1742_v10 = vld [vmem:[#allocation4 + $0x30] sm:$0xf0]  ;;  %v1769_v11 = vor.u32 %v2004_v2, %v1766_v3  ;;  %v1748_v12 = vld [vmem:[#allocation4 + $0x28] sm:$0xf]  ;;  %v1741_v18 = vor.u32 %v2001_v8, %v1740_v5 }
  0x24   :  { %v2002_v13 = vld [vmem:[#allocation4 + $0x34] sm:$0xf0]  ;;  %v2000_v14 = vld [vmem:[#allocation4 + $0x2c] sm:$0xf]  ;;  %v1750_v15 = vld [vmem:[#allocation4 + $0x38] sm:$0xf0]  ;;  %v1745_v23 = vor.u32 %v1999_v9, %v1742_v10 }
  0x25   :  { %335 = vmatpush.bf16.msra.mxu0 %v1773_v56  ;;  %v1724_v16 = vld [vmem:[#allocation4] sm:$0xf]  ;;  %v1997_v17 = vld [vmem:[#allocation4 + $0xc] sm:$0xf0]  ;;  %v1995_v19 = vld [vmem:[#allocation4 + $0x4] sm:$0xf]  ;;  %v1749_v24 = vor.u32 %v2002_v13, %v1748_v12  ;;  %v1753_v25 = vor.u32 %v2000_v14, %v1750_v15 }
  0x26   :  { %384 = vmatpush.bf16.msra.mxu1 %v1777_v57  ;;  %v1726_v20 = vld [vmem:[#allocation4 + $0x10] sm:$0xf0]  ;;  %v1732_v21 = vld [vmem:[#allocation4 + $0x8] sm:$0xf]  ;;  %v1998_v22 = vld [vmem:[#allocation4 + $0x14] sm:$0xf0]  ;;  %v1725_v28 = vor.u32 %v1997_v17, %v1724_v16 }
  0x27   :  { %433 = vmatpush.bf16.msra.mxu2 %v1781_v58  ;;  %482 = vmatpush.bf16.msra.mxu3 %v1785_v62  ;;  %v1996_v26 = vld [vmem:[#allocation4 + $0xc] sm:$0xf]  ;;  %v1734_v27 = vld [vmem:[#allocation4 + $0x18] sm:$0xf0]  ;;  %v1729_v29 = vor.u32 %v1995_v19, %v1726_v20  ;;  %v1733_v30 = vor.u32 %v1998_v22, %v1732_v21  ;;  %v1987_v33 = vld [vmem:[%s3015_s1] sm:$0xff]  ;;  %s1916_s21 = sld [smem:[#allocation3 + $0x1]] }
  0x28   :  { %v1737_v31 = vor.u32 %v1996_v26, %v1734_v27  ;;  %v2034_v32 = vld [vmem:[#allocation7 + $0x38] sm:$0xff]  ;;  %v2033_v36 = vld [vmem:[#allocation7 + $0x30] sm:$0xff]  ;;  %v1988_v40 = vld [vmem:[%s3015_s1 + $0x8] sm:$0xff]  ;;  %vm823_vm0 = vcmask 130112   ;;  %s1951_s22 = sld [smem:[#allocation3 + $0x2]]  ;;  %vm827_vm1 = vcmask 195712  }
  0x29   :  { %336 = vmatpush.bf16.msra.mxu0 %v1757_v4  ;;  %v2042_v34 = vld [vmem:[#allocation7 + $0x78] sm:$0xff]  ;;  %v2041_v37 = vld [vmem:[#allocation7 + $0x70] sm:$0xff]  ;;  %v2032_v41 = vld [vmem:[#allocation7 + $0x28] sm:$0xff]  ;;  %s1986_s23 = sld [smem:[#allocation3 + $0x3]]  ;;  %vm831_vm2 = vcmask 261312   ;;  %vm835_vm3 = vcmask 326912  }
  0x2a   :  { %385 = vmatpush.bf16.msra.mxu1 %v1761_v6  ;;  %v2050_v35 = vld [vmem:[#allocation7 + $0xb8] sm:$0xff]  ;;  %v2049_v39 = vld [vmem:[#allocation7 + $0xb0] sm:$0xff]  ;;  %v2040_v42 = vld [vmem:[#allocation7 + $0x68] sm:$0xff]  ;;  %vm839_vm4 = vcmask 392512   ;;  %vm843_vm5 = vcmask 458112   ;;  %vm847_vm6 = vcmask 523712  }
  0x2b   :  { %434 = vmatpush.bf16.msra.mxu2 %v1765_v7  ;;  %483 = vmatpush.bf16.msra.mxu3 %v1769_v11  ;;  %v2058_v38 = vld [vmem:[#allocation7 + $0xf8] sm:$0xff]  ;;  %v2057_v43 = vld [vmem:[#allocation7 + $0xf0] sm:$0xff]  ;;  %v2048_v44 = vld [vmem:[#allocation7 + $0xa8] sm:$0xff]  ;;  %vm851_vm7 = vcmask 589312   ;;  %vm855_vm8 = vcmask 654912   ;;  %vm859_vm9 = vcmask 720512  }
  0x2c   :  { %v1989_v45 = vld [vmem:[%s3015_s1 + $0x10] sm:$0xff]  ;;  %v2031_v46 = vld [vmem:[#allocation7 + $0x20] sm:$0xff]  ;;  %v2056_v48 = vld [vmem:[#allocation7 + $0xe8] sm:$0xff]  ;;  %vm863_vm10 = vcmask 786112   ;;  %vm867_vm11 = vcmask 851712   ;;  %vm871_vm12 = vcmask 917312  }
  0x2d   :  { %337 = vmatpush.bf16.msra.mxu0 %v1741_v18  ;;  %v2039_v47 = vld [vmem:[#allocation7 + $0x60] sm:$0xff]  ;;  %v1990_v50 = vld [vmem:[%s3015_s1 + $0x18] sm:$0xff]  ;;  %v2029_v56 = vld [vmem:[#allocation7 + $0x10] sm:$0xff]  ;;  %vm879_vm13 = vcmask 1048512   ;;  %vm875_vm14 = vcmask 982912   ;;  %s2430_s24 = smov [#allocation9]  }
  0x2e   :  { %386 = vmatpush.bf16.msra.mxu1 %v1745_v23  ;;  %v2047_v49 = vld [vmem:[#allocation7 + $0xa0] sm:$0xff]  ;;  %v2030_v51 = vld [vmem:[#allocation7 + $0x18] sm:$0xff]  ;;  %v2037_v57 = vld [vmem:[#allocation7 + $0x50] sm:$0xff]  ;;  %s1677_s25 = sshll.u32 %s2430_s24, 4  ;;  %s1679_s28 = sshll.u32 %s3021_s7, 4  ;;  %s1678_s25 = int_to_ptr.vmem [resolvable:$true] %s1677_s25  ;;  %s1680_s28 = int_to_ptr.hbm [resolvable:$true] %s1679_s28 }
  0x2f   :  { %435 = vmatpush.bf16.msra.mxu2 %v1749_v24  ;;  %484 = vmatpush.bf16.msra.mxu3 %v1753_v25  ;;  %v2038_v52 = vld [vmem:[#allocation7 + $0x58] sm:$0xff]  ;;  %v2055_v53 = vld [vmem:[#allocation7 + $0xe0] sm:$0xff]  ;;  %v2045_v59 = vld [vmem:[#allocation7 + $0x90] sm:$0xff] }
  0x30   :  { %v2046_v54 = vld [vmem:[#allocation7 + $0x98] sm:$0xff]  ;;  %v1991_v55 = vld [vmem:[%s3015_s1 + $0x20] sm:$0xff]  ;;  %v1992_v60 = vld [vmem:[%s3015_s1 + $0x28] sm:$0xff] }
  0x31   :  { %338 = vmatpush.bf16.msra.mxu0 %v1725_v28  ;;  %v2054_v58 = vld [vmem:[#allocation7 + $0xd8] sm:$0xff]  ;;  %v2028_v61 = vld [vmem:[#allocation7 + $0x8] sm:$0xff]  ;;  %v2053_v63 = vld [vmem:[#allocation7 + $0xd0] sm:$0xff] }
  0x32   :  { %387 = vmatpush.bf16.msra.mxu1 %v1729_v29  ;;  %v2036_v62 = vld [vmem:[#allocation7 + $0x48] sm:$0xff]  ;;  %v1993_v1 = vld [vmem:[%s3015_s1 + $0x30] sm:$0xff]  ;;  %v2027_v2 = vld [vmem:[#allocation7] sm:$0xff] }
  0x33   :  { %436 = vmatpush.bf16.msra.mxu2 %v1733_v30  ;;  %485 = vmatpush.bf16.msra.mxu3 %v1737_v31  ;;  %v2044_v0 = vld [vmem:[#allocation7 + $0x88] sm:$0xff]  ;;  %v2035_v3 = vld [vmem:[#allocation7 + $0x40] sm:$0xff]  ;;  %v1994_v5 = vld [vmem:[%s3015_s1 + $0x38] sm:$0xff] }
  0x34   :  { %339 = vmatmul.bf16.vlgmr.msra.gmra.mxu0 %v1987_v33  ;;  %v2052_v4 = vld [vmem:[#allocation7 + $0xc8] sm:$0xff]  ;;  %v2043_v6 = vld [vmem:[#allocation7 + $0x80] sm:$0xff] }
  0x35   :  { %667 = vmatpush.bf16.msrb.mxu0 %v2034_v32  ;;  %388 = vmatmul.bf16.vlgmr.msra.gmra.mxu1 %v1987_v33  ;;  %v2051_v7 = vld [vmem:[#allocation7 + $0xc0] sm:$0xff] }
  0x36   :  { %961 = vmatpush.bf16.msrb.mxu1 %v2042_v34  ;;  %437 = vmatmul.bf16.vlgmr.msra.gmra.mxu2 %v1987_v33  ;;  %v113_v8 = vld [vmem:[%s3017_s3] sm:$0xf] }
  0x37   :  { %486 = vmatmul.bf16.vlgmr.msra.gmra.mxu3 %v1987_v33  ;;  %1224 = vmatpush.bf16.msrb.mxu2 %v2050_v35  ;;  %v2507_v11 = vperm.slane %v113_v8, 0  ;;  %v2509_v12 = vperm.slane %v113_v8, 1  ;;  %v2513_v16 = vperm.slane %v113_v8, 2  ;;  %v2515_v19 = vperm.slane %v113_v8, 3 }
  0x38   :  { %1487 = vmatpush.bf16.msrb.mxu3 %v2058_v38 }
  0x39   :  { %668 = vmatpush.bf16.msrb.mxu0 %v2033_v36 }
  0x3a   :  { %962 = vmatpush.bf16.msrb.mxu1 %v2041_v37 }
  0x3b   :  { %1225 = vmatpush.bf16.msrb.mxu2 %v2049_v39 }
  0x3c   :  { %1488 = vmatpush.bf16.msrb.mxu3 %v2057_v43 }
  0x3d   :  { %669 = vmatpush.bf16.msrb.mxu0 %v2032_v41 }
  0x3e   :  { %963 = vmatpush.bf16.msrb.mxu1 %v2040_v42 }
  0x3f   :  { %1226 = vmatpush.bf16.msrb.mxu2 %v2048_v44 }
  0x40   :  { %1489 = vmatpush.bf16.msrb.mxu3 %v2056_v48 }
  0x41   :  { %670 = vmatpush.bf16.msrb.mxu0 %v2031_v46 }
  0x42   :  { %964 = vmatpush.bf16.msrb.mxu1 %v2039_v47 }
  0x43   :  { %1227 = vmatpush.bf16.msrb.mxu2 %v2047_v49 }
  0x44   :  { %344 = vmatmul.bf16.gmra.mxu0 %v1988_v40  ;;  %1490 = vmatpush.bf16.msrb.mxu3 %v2055_v53 }
  0x45   :  { %393 = vmatmul.bf16.gmra.mxu1 %v1988_v40  ;;  %671 = vmatpush.bf16.msrb.mxu0 %v2030_v51 }
  0x46   :  { %442 = vmatmul.bf16.gmra.mxu2 %v1988_v40  ;;  %965 = vmatpush.bf16.msrb.mxu1 %v2038_v52 }
  0x47   :  { %491 = vmatmul.bf16.gmra.mxu3 %v1988_v40  ;;  %1228 = vmatpush.bf16.msrb.mxu2 %v2046_v54 }
  0x48   :  { %1491 = vmatpush.bf16.msrb.mxu3 %v2054_v58 }
  0x49   :  { %672 = vmatpush.bf16.msrb.mxu0 %v2029_v56 }
  0x4a   :  { %966 = vmatpush.bf16.msrb.mxu1 %v2037_v57 }
  0x4b   :  { %1229 = vmatpush.bf16.msrb.mxu2 %v2045_v59 }
  0x4c   :  { %1492 = vmatpush.bf16.msrb.mxu3 %v2053_v63 }
  0x4d   :  { %673 = vmatpush.bf16.msrb.mxu0 %v2028_v61 }
  0x4e   :  { %967 = vmatpush.bf16.msrb.mxu1 %v2036_v62 }
  0x4f   :  { %1230 = vmatpush.bf16.msrb.mxu2 %v2044_v0 }
  0x50   :  { %1493 = vmatpush.bf16.msrb.mxu3 %v2052_v4 }
  0x51   :  { %674 = vmatpush.bf16.msrb.mxu0 %v2027_v2 }
  0x52   :  { %968 = vmatpush.bf16.msrb.mxu1 %v2035_v3 }
  0x53   :  { %1231 = vmatpush.bf16.msrb.mxu2 %v2043_v6 }
  0x54   :  { %349 = vmatmul.bf16.gmra.mxu0 %v1989_v45  ;;  %1494 = vmatpush.bf16.msrb.mxu3 %v2051_v7 }
  0x55   :  { %398 = vmatmul.bf16.gmra.mxu1 %v1989_v45 }
  0x56   :  { %447 = vmatmul.bf16.gmra.mxu2 %v1989_v45 }
  0x57   :  { %496 = vmatmul.bf16.gmra.mxu3 %v1989_v45 }
  0x64   :  { %354 = vmatmul.bf16.gmra.mxu0 %v1990_v50 }
  0x65   :  { %403 = vmatmul.bf16.gmra.mxu1 %v1990_v50 }
  0x66   :  { %452 = vmatmul.bf16.gmra.mxu2 %v1990_v50 }
  0x67   :  { %501 = vmatmul.bf16.gmra.mxu3 %v1990_v50 }
  0x74   :  { %359 = vmatmul.bf16.gmra.mxu0 %v1991_v55 }
  0x75   :  { %408 = vmatmul.bf16.gmra.mxu1 %v1991_v55 }
  0x76   :  { %457 = vmatmul.bf16.gmra.mxu2 %v1991_v55 }
  0x77   :  { %506 = vmatmul.bf16.gmra.mxu3 %v1991_v55 }
  0x84   :  { %364 = vmatmul.bf16.gmra.mxu0 %v1992_v60 }
  0x85   :  { %413 = vmatmul.bf16.gmra.mxu1 %v1992_v60 }
  0x86   :  { %462 = vmatmul.bf16.gmra.mxu2 %v1992_v60 }
  0x87   :  { %511 = vmatmul.bf16.gmra.mxu3 %v1992_v60 }
  0x94   :  { %369 = vmatmul.bf16.gmra.mxu0 %v1993_v1 }
  0x95   :  { %418 = vmatmul.bf16.gmra.mxu1 %v1993_v1 }
  0x96   :  { %467 = vmatmul.bf16.gmra.mxu2 %v1993_v1 }
  0x97   :  { %516 = vmatmul.bf16.gmra.mxu3 %v1993_v1 }
  0xa4   :  { %374 = vmatmul.bf16.gmra.mxu0 %v1994_v5 }
  0xa5   :  { %423 = vmatmul.bf16.gmra.mxu1 %v1994_v5 }
  0xa6   :  { %472 = vmatmul.bf16.gmra.mxu2 %v1994_v5 }
  0xa7   :  { %521 = vmatmul.bf16.gmra.mxu3 %v1994_v5 }
  0xb1   :  { %v340_v9 = vpop.f32.mrf.mxu0 }
  0xb2   :  { %v389_v10 = vpop.f32.mrf.mxu1  ;;  %v341_v13 = vadd.f32 %v340_v9, %v2507_v11 }
  0xb3   :  { %v390_v14 = vadd.f32 %v389_v10, %v2509_v12 }
  0xb4   :  { %2075 = vtanh.f32 %v341_v13 }
  0xb5   :  { %2077 = vtanh.f32 %v390_v14 }
  0xb9   :  { %v438_v15 = vpop.f32.mrf.mxu2  ;;  %v342_v18 = vpop.f32.mrf.mxu0 }
  0xba   :  { %v487_v17 = vpop.f32.mrf.mxu3  ;;  %v343_v20 = vadd.f32 %v342_v18, %v2507_v11  ;;  %v391_v21 = vpop.f32.mrf.mxu1  ;;  %v439_v23 = vadd.f32 %v438_v15, %v2513_v16 }
  0xbb   :  { %v392_v22 = vadd.f32 %v391_v21, %v2509_v12  ;;  %v488_v24 = vadd.f32 %v487_v17, %v2515_v19  ;;  %v2076_v26 = vpop.eup %2075 }
  0xbc   :  { %2079 = vtanh.f32 %v343_v20  ;;  %v2078_v30 = vpop.eup %2077 }
  0xbd   :  { %2081 = vtanh.f32 %v392_v22 }
  0xbe   :  { %2083 = vtanh.f32 %v439_v23 }
  0xbf   :  { %2085 = vtanh.f32 %v488_v24 }
  0xc1   :  { %v440_v25 = vpop.f32.mrf.mxu2  ;;  %v345_v29 = vpop.f32.mrf.mxu0 }
  0xc2   :  { %v441_v27 = vadd.f32 %v440_v25, %v2513_v16  ;;  %v489_v28 = vpop.f32.mrf.mxu3  ;;  %v394_v32 = vpop.f32.mrf.mxu1  ;;  %v346_v38 = vadd.f32 %v345_v29, %v2507_v11 }
  0xc3   :  { %v490_v31 = vadd.f32 %v489_v28, %v2515_v19  ;;  %v2080_v33 = vpop.eup %2079  ;;  %v395_v40 = vadd.f32 %v394_v32, %v2509_v12 }
  0xc4   :  { %2087 = vtanh.f32 %v441_v27  ;;  %v2082_v34 = vpop.eup %2081  ;;  %v591_v35 = vpack.c.bf16 %v2080_v33, %v2076_v26 }
  0xc5   :  { %2089 = vtanh.f32 %v490_v31  ;;  %v883_v36 = vpack.c.bf16 %v2082_v34, %v2078_v30  ;;  %v2084_v37 = vpop.eup %2083 }
  0xc6   :  { %675 = vmatmul.bf16.vlgmr.msrb.gmra.mxu0 %v591_v35  ;;  %v2086_v39 = vpop.eup %2085  ;;  %2091 = vtanh.f32 %v346_v38 }
  0xc7   :  { %969 = vmatmul.bf16.vlgmr.msrb.gmra.mxu1 %v883_v36  ;;  %2093 = vtanh.f32 %v395_v40 }
  0xc9   :  { %v443_v41 = vpop.f32.mrf.mxu2  ;;  %v347_v44 = vpop.f32.mrf.mxu0 }
  0xca   :  { %v2088_v42 = vpop.eup %2087  ;;  %v492_v43 = vpop.f32.mrf.mxu3  ;;  %v348_v46 = vadd.f32 %v347_v44, %v2507_v11  ;;  %v444_v51 = vadd.f32 %v443_v41, %v2513_v16 }
  0xcb   :  { %v2090_v45 = vpop.eup %2089  ;;  %v396_v47 = vpop.f32.mrf.mxu1  ;;  %v1146_v48 = vpack.c.bf16 %v2088_v42, %v2084_v37  ;;  %v493_v52 = vadd.f32 %v492_v43, %v2515_v19 }
  0xcc   :  { %v397_v49 = vadd.f32 %v396_v47, %v2509_v12  ;;  %v1409_v50 = vpack.c.bf16 %v2090_v45, %v2086_v39  ;;  %2095 = vtanh.f32 %v348_v46  ;;  %v2092_v54 = vpop.eup %2091 }
  0xcd   :  { %1232 = vmatmul.bf16.vlgmr.msrb.gmra.mxu2 %v1146_v48  ;;  %v2094_v58 = vpop.eup %2093 }
  0xce   :  { %1495 = vmatmul.bf16.vlgmr.msrb.gmra.mxu3 %v1409_v50  ;;  %2097 = vtanh.f32 %v397_v49 }
  0xcf   :  { %2099 = vtanh.f32 %v444_v51 }
  0xd0   :  { %2101 = vtanh.f32 %v493_v52 }
  0xd1   :  { %v445_v53 = vpop.f32.mrf.mxu2  ;;  %v350_v57 = vpop.f32.mrf.mxu0 }
  0xd2   :  { %v446_v55 = vadd.f32 %v445_v53, %v2513_v16  ;;  %v494_v56 = vpop.f32.mrf.mxu3  ;;  %v2096_v61 = vpop.eup %2095  ;;  %v351_v2 = vadd.f32 %v350_v57, %v2507_v11 }
  0xd3   :  { %v495_v59 = vadd.f32 %v494_v56, %v2515_v19  ;;  %v399_v60 = vpop.f32.mrf.mxu1  ;;  %v592_v63 = vpack.c.bf16 %v2096_v61, %v2092_v54 }
  0xd4   :  { %2103 = vtanh.f32 %v446_v55  ;;  %v2098_v62 = vpop.eup %2097  ;;  %v400_v4 = vadd.f32 %v399_v60, %v2509_v12 }
  0xd5   :  { %2105 = vtanh.f32 %v495_v59  ;;  %v884_v0 = vpack.c.bf16 %v2098_v62, %v2094_v58  ;;  %v2100_v1 = vpop.eup %2099 }
  0xd6   :  { %680 = vmatmul.bf16.gmra.mxu0 %v592_v63  ;;  %v2102_v3 = vpop.eup %2101  ;;  %2107 = vtanh.f32 %v351_v2 }
  0xd7   :  { %974 = vmatmul.bf16.gmra.mxu1 %v884_v0  ;;  %2109 = vtanh.f32 %v400_v4 }
  0xd9   :  { %v448_v5 = vpop.f32.mrf.mxu2  ;;  %v352_v8 = vpop.f32.mrf.mxu0 }
  0xda   :  { %v2104_v6 = vpop.eup %2103  ;;  %v497_v7 = vpop.f32.mrf.mxu3  ;;  %v353_v10 = vadd.f32 %v352_v8, %v2507_v11  ;;  %v449_v18 = vadd.f32 %v448_v5, %v2513_v16 }
  0xdb   :  { %v2106_v9 = vpop.eup %2105  ;;  %v401_v13 = vpop.f32.mrf.mxu1  ;;  %v1147_v14 = vpack.c.bf16 %v2104_v6, %v2100_v1  ;;  %v498_v20 = vadd.f32 %v497_v7, %v2515_v19 }
  0xdc   :  { %v402_v15 = vadd.f32 %v401_v13, %v2509_v12  ;;  %v1410_v17 = vpack.c.bf16 %v2106_v9, %v2102_v3  ;;  %2111 = vtanh.f32 %v353_v10  ;;  %v2108_v22 = vpop.eup %2107 }
  0xdd   :  { %1237 = vmatmul.bf16.gmra.mxu2 %v1147_v14  ;;  %v2110_v26 = vpop.eup %2109 }
  0xde   :  { %1500 = vmatmul.bf16.gmra.mxu3 %v1410_v17  ;;  %2113 = vtanh.f32 %v402_v15 }
  0xdf   :  { %2115 = vtanh.f32 %v449_v18 }
  0xe0   :  { %2117 = vtanh.f32 %v498_v20 }
  0xe1   :  { %v450_v21 = vpop.f32.mrf.mxu2  ;;  %v355_v25 = vpop.f32.mrf.mxu0 }
  0xe2   :  { %v451_v23 = vadd.f32 %v450_v21, %v2513_v16  ;;  %v499_v24 = vpop.f32.mrf.mxu3  ;;  %v2112_v29 = vpop.eup %2111  ;;  %v356_v33 = vadd.f32 %v355_v25, %v2507_v11 }
  0xe3   :  { %v500_v27 = vadd.f32 %v499_v24, %v2515_v19  ;;  %v404_v28 = vpop.f32.mrf.mxu1  ;;  %v593_v31 = vpack.c.bf16 %v2112_v29, %v2108_v22 }
  0xe4   :  { %2119 = vtanh.f32 %v451_v23  ;;  %v2114_v30 = vpop.eup %2113  ;;  %v405_v35 = vadd.f32 %v404_v28, %v2509_v12 }
  0xe5   :  { %2121 = vtanh.f32 %v500_v27  ;;  %v885_v32 = vpack.c.bf16 %v2114_v30, %v2110_v26  ;;  %v2116_v34 = vpop.eup %2115 }
  0xe6   :  { %685 = vmatmul.bf16.gmra.mxu0 %v593_v31  ;;  %v2118_v36 = vpop.eup %2117  ;;  %2123 = vtanh.f32 %v356_v33 }
  0xe7   :  { %979 = vmatmul.bf16.gmra.mxu1 %v885_v32  ;;  %2125 = vtanh.f32 %v405_v35 }
  0xe9   :  { %v453_v37 = vpop.f32.mrf.mxu2  ;;  %v357_v39 = vpop.f32.mrf.mxu0 }
  0xea   :  { %v2120_v38 = vpop.eup %2119  ;;  %v502_v40 = vpop.f32.mrf.mxu3  ;;  %v358_v43 = vadd.f32 %v357_v39, %v2507_v11  ;;  %v454_v47 = vadd.f32 %v453_v37, %v2513_v16 }
  0xeb   :  { %v2122_v41 = vpop.eup %2121  ;;  %v406_v42 = vpop.f32.mrf.mxu1  ;;  %v1148_v44 = vpack.c.bf16 %v2120_v38, %v2116_v34  ;;  %v503_v49 = vadd.f32 %v502_v40, %v2515_v19 }
  0xec   :  { %v407_v45 = vadd.f32 %v406_v42, %v2509_v12  ;;  %v1411_v46 = vpack.c.bf16 %v2122_v41, %v2118_v36  ;;  %2127 = vtanh.f32 %v358_v43  ;;  %v2124_v48 = vpop.eup %2123 }
  0xed   :  { %1242 = vmatmul.bf16.gmra.mxu2 %v1148_v44  ;;  %v2126_v51 = vpop.eup %2125 }
  0xee   :  { %2129 = vtanh.f32 %v407_v45  ;;  %1505 = vmatmul.bf16.gmra.mxu3 %v1411_v46 }
  0xef   :  { %2131 = vtanh.f32 %v454_v47 }
  0xf1   :  { %v455_v50 = vpop.f32.mrf.mxu2  ;;  %v360_v53 = vpop.f32.mrf.mxu0 }
  0xf2   :  { %v456_v52 = vadd.f32 %v455_v50, %v2513_v16  ;;  %v504_v54 = vpop.f32.mrf.mxu3  ;;  %v2128_v55 = vpop.eup %2127  ;;  %v361_v61 = vadd.f32 %v360_v53, %v2507_v11 }
  0xf3   :  { %v409_v56 = vpop.f32.mrf.mxu1  ;;  %v505_v57 = vadd.f32 %v504_v54, %v2515_v19  ;;  %v594_v59 = vpack.c.bf16 %v2128_v55, %v2124_v48 }
  0xf4   :  { %v2130_v58 = vpop.eup %2129  ;;  %2133 = vtanh.f32 %v456_v52  ;;  %v410_v63 = vadd.f32 %v409_v56, %v2509_v12 }
  0xf5   :  { %2135 = vtanh.f32 %v503_v49  ;;  %v886_v60 = vpack.c.bf16 %v2130_v58, %v2126_v51  ;;  %v2132_v62 = vpop.eup %2131 }
  0xf6   :  { %2137 = vtanh.f32 %v505_v57  ;;  %690 = vmatmul.bf16.gmra.mxu0 %v594_v59 }
  0xf7   :  { %984 = vmatmul.bf16.gmra.mxu1 %v886_v60  ;;  %2139 = vtanh.f32 %v361_v61 }
  0xf8   :  { %2141 = vtanh.f32 %v410_v63 }
  0xf9   :  { %v458_v0 = vpop.f32.mrf.mxu2  ;;  %v362_v2 = vpop.f32.mrf.mxu0 }
  0xfa   :  { %v2134_v1 = vpop.eup %2133  ;;  %v507_v3 = vpop.f32.mrf.mxu3  ;;  %v363_v6 = vadd.f32 %v362_v2, %v2507_v11  ;;  %v459_v10 = vadd.f32 %v458_v0, %v2513_v16 }
  0xfb   :  { %v2136_v4 = vpop.eup %2135  ;;  %v411_v5 = vpop.f32.mrf.mxu1  ;;  %v1149_v7 = vpack.c.bf16 %v2134_v1, %v2132_v62  ;;  %v508_v17 = vadd.f32 %v507_v3, %v2515_v19 }
  0xfc   :  { %v412_v8 = vadd.f32 %v411_v5, %v2509_v12  ;;  %v2138_v9 = vpop.eup %2137  ;;  %2143 = vtanh.f32 %v363_v6 }
  0xfd   :  { %1247 = vmatmul.bf16.gmra.mxu2 %v1149_v7  ;;  %v1412_v13 = vpack.c.bf16 %v2138_v9, %v2136_v4  ;;  %v2140_v14 = vpop.eup %2139 }
  0xfe   :  { %2145 = vtanh.f32 %v412_v8  ;;  %v2142_v18 = vpop.eup %2141 }
  0xff   :  { %1510 = vmatmul.bf16.gmra.mxu3 %v1412_v13  ;;  %2147 = vtanh.f32 %v459_v10 }
 0x101   :  { %v460_v15 = vpop.f32.mrf.mxu2  ;;  %v365_v20 = vpop.f32.mrf.mxu0 }
 0x102   :  { %v461_v21 = vadd.f32 %v460_v15, %v2513_v16  ;;  %v509_v22 = vpop.f32.mrf.mxu3  ;;  %v2144_v23 = vpop.eup %2143  ;;  %v366_v29 = vadd.f32 %v365_v20, %v2507_v11 }
 0x103   :  { %v414_v24 = vpop.f32.mrf.mxu1  ;;  %v510_v25 = vadd.f32 %v509_v22, %v2515_v19  ;;  %v595_v27 = vpack.c.bf16 %v2144_v23, %v2140_v14 }
 0x104   :  { %v2146_v26 = vpop.eup %2145  ;;  %2149 = vtanh.f32 %v461_v21  ;;  %v415_v31 = vadd.f32 %v414_v24, %v2509_v12 }
 0x105   :  { %2151 = vtanh.f32 %v508_v17  ;;  %v887_v28 = vpack.c.bf16 %v2146_v26, %v2142_v18  ;;  %v2148_v30 = vpop.eup %2147 }
 0x106   :  { %695 = vmatmul.bf16.gmra.mxu0 %v595_v27  ;;  %2153 = vtanh.f32 %v510_v25 }
 0x107   :  { %989 = vmatmul.bf16.gmra.mxu1 %v887_v28  ;;  %2155 = vtanh.f32 %v366_v29 }
 0x108   :  { %2157 = vtanh.f32 %v415_v31 }
 0x109   :  { %v463_v32 = vpop.f32.mrf.mxu2  ;;  %v367_v34 = vpop.f32.mrf.mxu0 }
 0x10a   :  { %v2150_v33 = vpop.eup %2149  ;;  %v512_v35 = vpop.f32.mrf.mxu3  ;;  %v368_v37 = vadd.f32 %v367_v34, %v2507_v11  ;;  %v464_v42 = vadd.f32 %v463_v32, %v2513_v16 }
 0x10b   :  { %v2152_v36 = vpop.eup %2151  ;;  %v416_v38 = vpop.f32.mrf.mxu1  ;;  %v1150_v39 = vpack.c.bf16 %v2150_v33, %v2148_v30  ;;  %v513_v46 = vadd.f32 %v512_v35, %v2515_v19 }
 0x10c   :  { %v417_v40 = vadd.f32 %v416_v38, %v2509_v12  ;;  %v2154_v41 = vpop.eup %2153  ;;  %2159 = vtanh.f32 %v368_v37 }
 0x10d   :  { %1252 = vmatmul.bf16.gmra.mxu2 %v1150_v39  ;;  %v1413_v43 = vpack.c.bf16 %v2154_v41, %v2152_v36  ;;  %v2156_v44 = vpop.eup %2155 }
 0x10e   :  { %2161 = vtanh.f32 %v417_v40  ;;  %v2158_v47 = vpop.eup %2157 }
 0x10f   :  { %1515 = vmatmul.bf16.gmra.mxu3 %v1413_v43  ;;  %2163 = vtanh.f32 %v464_v42 }
 0x111   :  { %v465_v45 = vpop.f32.mrf.mxu2  ;;  %v370_v48 = vpop.f32.mrf.mxu0 }
 0x112   :  { %v466_v49 = vadd.f32 %v465_v45, %v2513_v16  ;;  %v514_v50 = vpop.f32.mrf.mxu3  ;;  %v2160_v51 = vpop.eup %2159  ;;  %v371_v57 = vadd.f32 %v370_v48, %v2507_v11 }
 0x113   :  { %v419_v52 = vpop.f32.mrf.mxu1  ;;  %v515_v53 = vadd.f32 %v514_v50, %v2515_v19  ;;  %v596_v55 = vpack.c.bf16 %v2160_v51, %v2156_v44 }
 0x114   :  { %v2162_v54 = vpop.eup %2161  ;;  %2165 = vtanh.f32 %v466_v49  ;;  %v420_v59 = vadd.f32 %v419_v52, %v2509_v12 }
 0x115   :  { %2167 = vtanh.f32 %v513_v46  ;;  %v888_v56 = vpack.c.bf16 %v2162_v54, %v2158_v47  ;;  %v2164_v58 = vpop.eup %2163 }
 0x116   :  { %700 = vmatmul.bf16.gmra.mxu0 %v596_v55  ;;  %2169 = vtanh.f32 %v515_v53 }
 0x117   :  { %994 = vmatmul.bf16.gmra.mxu1 %v888_v56  ;;  %2171 = vtanh.f32 %v371_v57 }
 0x118   :  { %2173 = vtanh.f32 %v420_v59  ;;  %v2594_v59 = vld [vmem:[%s3020_s6] ss:$0 sm:$0xff] }
 0x119   :  { %v468_v60 = vpop.f32.mrf.mxu2  ;;  %v372_v62 = vpop.f32.mrf.mxu0 }
 0x11a   :  { %v2166_v61 = vpop.eup %2165  ;;  %v517_v63 = vpop.f32.mrf.mxu3  ;;  %v373_v1 = vadd.f32 %v372_v62, %v2507_v11  ;;  %v469_v6 = vadd.f32 %v468_v60, %v2513_v16  ;;  %v2599_v60 = vld [vmem:[%s3020_s6 + $0x1] ss:$0 sm:$0xff] }
 0x11b   :  { %v2168_v0 = vpop.eup %2167  ;;  %v421_v2 = vpop.f32.mrf.mxu1  ;;  %v1151_v3 = vpack.c.bf16 %v2166_v61, %v2164_v58  ;;  %v518_v9 = vadd.f32 %v517_v63, %v2515_v19 }
 0x11c   :  { %v422_v4 = vadd.f32 %v421_v2, %v2509_v12  ;;  %v2170_v5 = vpop.eup %2169  ;;  %2175 = vtanh.f32 %v373_v1 }
 0x11d   :  { %1257 = vmatmul.bf16.gmra.mxu2 %v1151_v3  ;;  %v1414_v7 = vpack.c.bf16 %v2170_v5, %v2168_v0  ;;  %v2172_v8 = vpop.eup %2171  ;;  %v2606_v3 = vld [vmem:[%s3019_s5 + $0x2] ss:$0 sm:$0xff] }
 0x11e   :  { %2177 = vtanh.f32 %v422_v4  ;;  %v2174_v13 = vpop.eup %2173 }
 0x11f   :  { %1520 = vmatmul.bf16.gmra.mxu3 %v1414_v7  ;;  %2179 = vtanh.f32 %v469_v6 }
 0x121   :  { %v470_v10 = vpop.f32.mrf.mxu2  ;;  %v375_v14 = vpop.f32.mrf.mxu0 }
 0x122   :  { %v471_v15 = vadd.f32 %v470_v10, %v2513_v16  ;;  %v519_v17 = vpop.f32.mrf.mxu3  ;;  %v2176_v18 = vpop.eup %2175  ;;  %v376_v25 = vadd.f32 %v375_v14, %v2507_v11 }
 0x123   :  { %v424_v20 = vpop.f32.mrf.mxu1  ;;  %v520_v21 = vadd.f32 %v519_v17, %v2515_v19  ;;  %v597_v23 = vpack.c.bf16 %v2176_v18, %v2172_v8 }
 0x124   :  { %v2178_v22 = vpop.eup %2177  ;;  %2181 = vtanh.f32 %v471_v15  ;;  %v425_v27 = vadd.f32 %v424_v20, %v2509_v12 }
 0x125   :  { %2183 = vtanh.f32 %v518_v9  ;;  %v889_v24 = vpack.c.bf16 %v2178_v22, %v2174_v13  ;;  %v2180_v26 = vpop.eup %2179  ;;  %v2614_v13 = vld [vmem:[%s3019_s5 + $0x3] ss:$0 sm:$0xff] }
 0x126   :  { %705 = vmatmul.bf16.gmra.mxu0 %v597_v23  ;;  %2185 = vtanh.f32 %v520_v21 }
 0x127   :  { %999 = vmatmul.bf16.gmra.mxu1 %v889_v24  ;;  %2187 = vtanh.f32 %v376_v25 }
 0x128   :  { %2189 = vtanh.f32 %v425_v27 }
 0x129   :  { %v473_v28 = vpop.f32.mrf.mxu2  ;;  %v377_v30 = vpop.f32.mrf.mxu0 }
 0x12a   :  { %v2182_v29 = vpop.eup %2181  ;;  %v522_v31 = vpop.f32.mrf.mxu3  ;;  %v378_v33 = vadd.f32 %v377_v30, %v2507_v11  ;;  %v474_v38 = vadd.f32 %v473_v28, %v2513_v16 }
 0x12b   :  { %v2184_v32 = vpop.eup %2183  ;;  %v426_v34 = vpop.f32.mrf.mxu1  ;;  %v1152_v35 = vpack.c.bf16 %v2182_v29, %v2180_v26  ;;  %v523_v40 = vadd.f32 %v522_v31, %v2515_v19  ;;  %v2625_v26 = vld [vmem:[%s3020_s6 + $0x2] ss:$0 sm:$0xff] }
 0x12c   :  { %v427_v36 = vadd.f32 %v426_v34, %v2509_v12  ;;  %v2186_v37 = vpop.eup %2185  ;;  %2191 = vtanh.f32 %v378_v33 }
 0x12d   :  { %1262 = vmatmul.bf16.gmra.mxu2 %v1152_v35  ;;  %v1415_v39 = vpack.c.bf16 %v2186_v37, %v2184_v32  ;;  %v2188_v41 = vpop.eup %2187 }
 0x12e   :  { %2193 = vtanh.f32 %v427_v36  ;;  %v2190_v43 = vpop.eup %2189 }
 0x12f   :  { %1525 = vmatmul.bf16.gmra.mxu3 %v1415_v39  ;;  %2195 = vtanh.f32 %v474_v38 }
 0x130   :  { %2197 = vtanh.f32 %v523_v40  ;;  %v2636_v40 = vld [vmem:[%s3020_s6 + $0x3] ss:$0 sm:$0xff]  ;;  %s784_s6 = sld [smem:[#allocation3]] }
 0x131   :  { %v475_v42 = vpop.f32.mrf.mxu2 }
 0x132   :  { %v476_v11 = vadd.f32 %v475_v42, %v2513_v16  ;;  %v524_v44 = vpop.f32.mrf.mxu3  ;;  %v2192_v45 = vpop.eup %2191  ;;  %v2582_v16 = vld [vmem:[%s3019_s5] ss:$0 sm:$0xff] }
 0x133   :  { %v525_v12 = vadd.f32 %v524_v44, %v2515_v19  ;;  %v598_v47 = vpack.c.bf16 %v2192_v45, %v2188_v41  ;;  %v2587_v19 = vld [vmem:[%s3019_s5 + $0x1] ss:$0 sm:$0xff] }
 0x134   :  { %v2194_v46 = vpop.eup %2193  ;;  %2199 = vtanh.f32 %v476_v11 }
 0x135   :  { %v890_v48 = vpack.c.bf16 %v2194_v46, %v2190_v43  ;;  %2201 = vtanh.f32 %v525_v12  ;;  %v2196_v49 = vpop.eup %2195 }
 0x136   :  { %710 = vmatmul.bf16.gmra.mxu0 %v598_v47  ;;  %v2198_v50 = vpop.eup %2197 }
 0x137   :  { %1004 = vmatmul.bf16.gmra.mxu1 %v890_v48 }
 0x13a   :  { %v2200_v51 = vpop.eup %2199 }
 0x13b   :  { %v2202_v52 = vpop.eup %2201  ;;  %v1153_v53 = vpack.c.bf16 %v2200_v51, %v2196_v49 }
 0x13c   :  { %v1416_v54 = vpack.c.bf16 %v2202_v52, %v2198_v50 }
 0x13d   :  { %1267 = vmatmul.bf16.gmra.mxu2 %v1153_v53 }
 0x13f   :  { %1530 = vmatmul.bf16.gmra.mxu3 %v1416_v54 }
 0x143   :  { %v676_v55 = vpop.f32.mrf.mxu0 }
 0x144   :  { %v677_v56 = vadd.f32 %v2582_v16, %v676_v55  ;;  %v970_v57 = vpop.f32.mrf.mxu1 }
 0x145   :  { %v971_v58 = vadd.f32 %v2587_v19, %v970_v57 }
 0x146   :  { %2203 = vtanh.f32 %v677_v56 }
 0x147   :  { %2205 = vtanh.f32 %v971_v58 }
 0x14b   :  { %v678_v61 = vpop.f32.mrf.mxu0 }
 0x14c   :  { %v2204_v62 = vpop.eup %2203  ;;  %v679_v63 = vadd.f32 %v2582_v16, %v678_v61  ;;  %v972_v0 = vpop.f32.mrf.mxu1 }
 0x14d   :  { %v2206_v1 = vpop.eup %2205  ;;  %v973_v2 = vadd.f32 %v2587_v19, %v972_v0  ;;  %v736_v4 = vmul.f32 %v2204_v62, %v2594_v59 }
 0x14e   :  { %2207 = vtanh.f32 %v679_v63  ;;  %v1031_v5 = vmul.f32 %v2206_v1, %v2599_v60 }
 0x14f   :  { %2209 = vtanh.f32 %v973_v2  ;;  %752 = vadd.xlane.f32.xlu0 %v736_v4 }
 0x150   :  { %v1233_v6 = vpop.f32.mrf.mxu2  ;;  %1047 = vadd.xlane.f32.xlu1 %v1031_v5 }
 0x151   :  { %v1496_v7 = vpop.f32.mrf.mxu3  ;;  %v1234_v8 = vadd.f32 %v2606_v3, %v1233_v6 }
 0x152   :  { %v1497_v23 = vadd.f32 %v2614_v13, %v1496_v7 }
 0x153   :  { %v681_v9 = vpop.f32.mrf.mxu0  ;;  %2211 = vtanh.f32 %v1234_v8 }
 0x154   :  { %v2208_v10 = vpop.eup %2207  ;;  %v682_v14 = vadd.f32 %v2582_v16, %v681_v9  ;;  %v975_v15 = vpop.f32.mrf.mxu1 }
 0x155   :  { %v2210_v17 = vpop.eup %2209  ;;  %v976_v18 = vadd.f32 %v2587_v19, %v975_v15  ;;  %v737_v20 = vmul.f32 %v2208_v10, %v2594_v59 }
 0x156   :  { %2213 = vtanh.f32 %v682_v14  ;;  %v1032_v21 = vmul.f32 %v2210_v17, %v2599_v60 }
 0x157   :  { %2215 = vtanh.f32 %v976_v18  ;;  %754 = vadd.xlane.f32.xlu0 %v737_v20 }
 0x158   :  { %v1235_v22 = vpop.f32.mrf.mxu2  ;;  %1049 = vadd.xlane.f32.xlu2 %v1032_v21  ;;  %2217 = vtanh.f32 %v1497_v23 }
 0x159   :  { %v1236_v24 = vadd.f32 %v2606_v3, %v1235_v22  ;;  %v1498_v25 = vpop.f32.mrf.mxu3  ;;  %v2212_v27 = vpop.eup %2211 }
 0x15a   :  { %v1294_v34 = vmul.f32 %v2212_v27, %v2625_v26  ;;  %v1499_v38 = vadd.f32 %v2614_v13, %v1498_v25 }
 0x15b   :  { %v683_v28 = vpop.f32.mrf.mxu0  ;;  %2219 = vtanh.f32 %v1236_v24 }
 0x15c   :  { %v2214_v29 = vpop.eup %2213  ;;  %v684_v30 = vadd.f32 %v2582_v16, %v683_v28  ;;  %v977_v31 = vpop.f32.mrf.mxu1 }
 0x15d   :  { %v2216_v32 = vpop.eup %2215  ;;  %v738_v33 = vmul.f32 %v2214_v29, %v2594_v59  ;;  %v978_v37 = vadd.f32 %v2587_v19, %v977_v31 }
 0x15e   :  { %2221 = vtanh.f32 %v684_v30  ;;  %v1033_v35 = vmul.f32 %v2216_v32, %v2599_v60  ;;  %v2218_v39 = vpop.eup %2217 }
 0x15f   :  { %756 = vadd.xlane.f32.xlu1 %v738_v33  ;;  %2223 = vtanh.f32 %v978_v37  ;;  %v1557_v46 = vmul.f32 %v2218_v39, %v2636_v40 }
 0x160   :  { %v1238_v36 = vpop.f32.mrf.mxu2  ;;  %1310 = vadd.xlane.f32.xlu2 %v1294_v34  ;;  %1051 = vadd.xlane.f32.xlu0 %v1033_v35  ;;  %2225 = vtanh.f32 %v1499_v38 }
 0x161   :  { %v2220_v41 = vpop.eup %2219  ;;  %v1501_v11 = vpop.f32.mrf.mxu3  ;;  %v1239_v49 = vadd.f32 %v2606_v3, %v1238_v36 }
 0x162   :  { %v1295_v47 = vmul.f32 %v2220_v41, %v2625_v26  ;;  %v1502_v62 = vadd.f32 %v2614_v13, %v1501_v11 }
 0x163   :  { %v686_v42 = vpop.f32.mrf.mxu0 }
 0x164   :  { %v2222_v43 = vpop.eup %2221  ;;  %v687_v44 = vadd.f32 %v2582_v16, %v686_v42  ;;  %v980_v45 = vpop.f32.mrf.mxu1 }
 0x165   :  { %v739_v12 = vmul.f32 %v2222_v43, %v2594_v59  ;;  %v981_v50 = vadd.f32 %v2587_v19, %v980_v45  ;;  %v2224_v51 = vpop.eup %2223 }
 0x166   :  { %2227 = vtanh.f32 %v687_v44  ;;  %v2226_v52 = vpop.eup %2225  ;;  %v1034_v57 = vmul.f32 %v2224_v51, %v2599_v60 }
 0x167   :  { %758 = vadd.xlane.f32.xlu1 %v739_v12  ;;  %2229 = vtanh.f32 %v1239_v49  ;;  %v1558_v61 = vmul.f32 %v2226_v52, %v2636_v40 }
 0x168   :  { %v1240_v48 = vpop.f32.mrf.mxu2  ;;  %1573 = vadd.xlane.f32.xlu2 %v1557_v46  ;;  %1312 = vadd.xlane.f32.xlu0 %v1295_v47  ;;  %2231 = vtanh.f32 %v981_v50 }
 0x169   :  { %v1503_v58 = vpop.f32.mrf.mxu3  ;;  %v1241_v0 = vadd.f32 %v2606_v3, %v1240_v48 }
 0x16a   :  { %v1504_v14 = vadd.f32 %v2614_v13, %v1503_v58 }
 0x16b   :  { %v688_v4 = vpop.f32.mrf.mxu0 }
 0x16c   :  { %v2228_v53 = vpop.eup %2227  ;;  %v982_v54 = vpop.f32.mrf.mxu1  ;;  %v689_v30 = vadd.f32 %v2582_v16, %v688_v4 }
 0x16d   :  { %v983_v55 = vadd.f32 %v2587_v19, %v982_v54  ;;  %v740_v56 = vmul.f32 %v2228_v53, %v2594_v59  ;;  %v2230_v2 = vpop.eup %2229 }
 0x16e   :  { %v2232_v5 = vpop.eup %2231  ;;  %v1296_v8 = vmul.f32 %v2230_v2, %v2625_v26 }
 0x16f   :  { %2233 = vtanh.f32 %v983_v55  ;;  %1053 = vadd.xlane.f32.xlu1 %v1034_v57  ;;  %v1035_v9 = vmul.f32 %v2232_v5, %v2599_v60 }
 0x170   :  { %v1243_v63 = vpop.f32.mrf.mxu2  ;;  %760 = vadd.xlane.f32.xlu2 %v740_v56  ;;  %1575 = vadd.xlane.f32.xlu0 %v1558_v61  ;;  %2235 = vtanh.f32 %v1502_v62 }
 0x171   :  { %v1244_v1 = vadd.f32 %v2606_v3, %v1243_v63  ;;  %2237 = vtanh.f32 %v1241_v0  ;;  %v1506_v15 = vpop.f32.mrf.mxu3 }
 0x172   :  { %v1507_v20 = vadd.f32 %v2614_v13, %v1506_v15 }
 0x173   :  { %2239 = vtanh.f32 %v1244_v1  ;;  %v691_v24 = vpop.f32.mrf.mxu0 }
 0x174   :  { %v985_v6 = vpop.f32.mrf.mxu1  ;;  %2241 = vtanh.f32 %v1504_v14  ;;  %v692_v33 = vadd.f32 %v2582_v16, %v691_v24 }
 0x175   :  { %v2234_v7 = vpop.eup %2233  ;;  %v986_v17 = vadd.f32 %v2587_v19, %v985_v6 }
 0x176   :  { %v1036_v10 = vmul.f32 %v2234_v7, %v2599_v60  ;;  %v2236_v18 = vpop.eup %2235 }
 0x177   :  { %1314 = vadd.xlane.f32.xlu1 %v1296_v8  ;;  %v2238_v21 = vpop.eup %2237  ;;  %2243 = vtanh.f32 %v986_v17  ;;  %v1559_v27 = vmul.f32 %v2236_v18, %v2636_v40 }
 0x178   :  { %1055 = vadd.xlane.f32.xlu2 %v1035_v9  ;;  %1057 = vadd.xlane.f32.xlu0 %v1036_v10  ;;  %v1245_v22 = vpop.f32.mrf.mxu2  ;;  %2245 = vtanh.f32 %v1507_v20  ;;  %v1297_v28 = vmul.f32 %v2238_v21, %v2625_v26 }
 0x179   :  { %v2240_v23 = vpop.eup %2239  ;;  %v1246_v31 = vadd.f32 %v2606_v3, %v1245_v22  ;;  %2247 = vtanh.f32 %v689_v30  ;;  %v1508_v36 = vpop.f32.mrf.mxu3 }
 0x17a   :  { %v1298_v29 = vmul.f32 %v2240_v23, %v2625_v26  ;;  %v2242_v32 = vpop.eup %2241  ;;  %v1509_v11 = vadd.f32 %v2614_v13, %v1508_v36 }
 0x17b   :  { %2249 = vtanh.f32 %v1246_v31  ;;  %v693_v39 = vpop.f32.mrf.mxu0  ;;  %v1560_v42 = vmul.f32 %v2242_v32, %v2636_v40 }
 0x17c   :  { %v987_v25 = vpop.f32.mrf.mxu1  ;;  %2251 = vtanh.f32 %v692_v33  ;;  %v694_v53 = vadd.f32 %v2582_v16, %v693_v39 }
 0x17d   :  { %v2244_v34 = vpop.eup %2243  ;;  %v988_v44 = vadd.f32 %v2587_v19, %v987_v25  ;;  %2253 = vtanh.f32 %v1509_v11 }
 0x17e   :  { %v2246_v35 = vpop.eup %2245  ;;  %v1037_v38 = vmul.f32 %v2244_v34, %v2599_v60 }
 0x17f   :  { %1577 = vadd.xlane.f32.xlu1 %v1559_v27  ;;  %v1561_v43 = vmul.f32 %v2246_v35, %v2636_v40  ;;  %v2248_v45 = vpop.eup %2247  ;;  %2255 = vtanh.f32 %v988_v44 }
 0x180   :  { %1316 = vadd.xlane.f32.xlu2 %v1297_v28  ;;  %1318 = vadd.xlane.f32.xlu0 %v1298_v29  ;;  %v1248_v37 = vpop.f32.mrf.mxu2  ;;  %v741_v51 = vmul.f32 %v2248_v45, %v2594_v59 }
 0x181   :  { %v2250_v46 = vpop.eup %2249  ;;  %v1249_v54 = vadd.f32 %v2606_v3, %v1248_v37 }
 0x182   :  { %v2252_v47 = vpop.eup %2251  ;;  %v1511_v48 = vpop.f32.mrf.mxu3  ;;  %v1299_v49 = vmul.f32 %v2250_v46, %v2625_v26 }
 0x183   :  { %v742_v52 = vmul.f32 %v2252_v47, %v2594_v59  ;;  %v696_v55 = vpop.f32.mrf.mxu0  ;;  %v2254_v56 = vpop.eup %2253  ;;  %v1512_v4 = vadd.f32 %v2614_v13, %v1511_v48 }
 0x184   :  { %v990_v41 = vpop.f32.mrf.mxu1  ;;  %v1562_v63 = vmul.f32 %v2254_v56, %v2636_v40  ;;  %v697_v21 = vadd.f32 %v2582_v16, %v696_v55 }
 0x185   :  { %v991_v12 = vadd.f32 %v2587_v19, %v990_v41  ;;  %v2256_v58 = vpop.eup %2255 }
 0x186   :  { %v1038_v1 = vmul.f32 %v2256_v58, %v2599_v60 }
 0x187   :  { %1059 = vadd.xlane.f32.xlu1 %v1037_v38  ;;  %2257 = vtanh.f32 %v991_v12 }
 0x188   :  { %1579 = vadd.xlane.f32.xlu2 %v1560_v42  ;;  %1581 = vadd.xlane.f32.xlu0 %v1561_v43  ;;  %v1250_v50 = vpop.f32.mrf.mxu2  ;;  %2259 = vtanh.f32 %v694_v53 }
 0x189   :  { %v1251_v57 = vadd.f32 %v2606_v3, %v1250_v50  ;;  %2261 = vtanh.f32 %v1249_v54 }
 0x18a   :  { %v1513_v0 = vpop.f32.mrf.mxu3 }
 0x18b   :  { %2263 = vtanh.f32 %v1251_v57  ;;  %v1514_v7 = vadd.f32 %v2614_v13, %v1513_v0  ;;  %v698_v9 = vpop.f32.mrf.mxu0 }
 0x18c   :  { %v992_v61 = vpop.f32.mrf.mxu1  ;;  %2265 = vtanh.f32 %v1512_v4  ;;  %v699_v25 = vadd.f32 %v2582_v16, %v698_v9 }
 0x18d   :  { %v2258_v62 = vpop.eup %2257  ;;  %v993_v5 = vadd.f32 %v2587_v19, %v992_v61 }
 0x18e   :  { %v1039_v2 = vmul.f32 %v2258_v62, %v2599_v60  ;;  %v2260_v6 = vpop.eup %2259 }
 0x18f   :  { %1320 = vadd.xlane.f32.xlu1 %v1299_v49  ;;  %v2262_v8 = vpop.eup %2261  ;;  %2267 = vtanh.f32 %v993_v5  ;;  %v743_v17 = vmul.f32 %v2260_v6, %v2594_v59 }
 0x190   :  { %762 = vadd.xlane.f32.xlu2 %v741_v51  ;;  %764 = vadd.xlane.f32.xlu0 %v742_v52  ;;  %v1253_v14 = vpop.f32.mrf.mxu2  ;;  %2269 = vtanh.f32 %v1514_v7  ;;  %v1300_v18 = vmul.f32 %v2262_v8, %v2625_v26 }
 0x191   :  { %v2264_v10 = vpop.eup %2263  ;;  %v1254_v22 = vadd.f32 %v2606_v3, %v1253_v14  ;;  %2271 = vtanh.f32 %v697_v21  ;;  %v818_v21 = vlaneseq }
 0x192   :  { %v1301_v20 = vmul.f32 %v2264_v10, %v2625_v26  ;;  %v1516_v23 = vpop.f32.mrf.mxu3  ;;  %v2266_v24 = vpop.eup %2265 }
 0x193   :  { %2273 = vtanh.f32 %v1254_v22  ;;  %v701_v29 = vpop.f32.mrf.mxu0  ;;  %v1563_v33 = vmul.f32 %v2266_v24, %v2636_v40  ;;  %v1517_v35 = vadd.f32 %v2614_v13, %v1516_v23 }
 0x194   :  { %v995_v15 = vpop.f32.mrf.mxu1  ;;  %2275 = vtanh.f32 %v699_v25  ;;  %v702_v12 = vadd.f32 %v2582_v16, %v701_v29  ;;  %v2712_v25 = vstv %s784_s6 }
 0x195   :  { %v2268_v27 = vpop.eup %2267  ;;  %v996_v36 = vadd.f32 %v2587_v19, %v995_v15  ;;  %2277 = vtanh.f32 %v1517_v35 }
 0x196   :  { %v2270_v28 = vpop.eup %2269  ;;  %v1040_v30 = vmul.f32 %v2268_v27, %v2599_v60 }
 0x197   :  { %1583 = vadd.xlane.f32.xlu1 %v1562_v63  ;;  %v1564_v34 = vmul.f32 %v2270_v28, %v2636_v40  ;;  %v2272_v37 = vpop.eup %2271  ;;  %2279 = vtanh.f32 %v996_v36 }
 0x198   :  { %1061 = vadd.xlane.f32.xlu2 %v1038_v1  ;;  %1063 = vadd.xlane.f32.xlu0 %v1039_v2  ;;  %v1255_v31 = vpop.f32.mrf.mxu2  ;;  %v744_v44 = vmul.f32 %v2272_v37, %v2594_v59 }
 0x199   :  { %v2274_v39 = vpop.eup %2273  ;;  %v1256_v46 = vadd.f32 %v2606_v3, %v1255_v31  ;;  %v2719_v31 = vstv %s1916_s21 }
 0x19a   :  { %v1518_v41 = vpop.f32.mrf.mxu3  ;;  %v2276_v42 = vpop.eup %2275  ;;  %v1302_v43 = vmul.f32 %v2274_v39, %v2625_v26 }
 0x19b   :  { %v703_v11 = vpop.f32.mrf.mxu0  ;;  %v745_v45 = vmul.f32 %v2276_v42, %v2594_v59  ;;  %v2278_v48 = vpop.eup %2277  ;;  %v1519_v56 = vadd.f32 %v2614_v13, %v1518_v41 }
 0x19c   :  { %v997_v32 = vpop.f32.mrf.mxu1  ;;  %v1565_v53 = vmul.f32 %v2278_v48, %v2636_v40  ;;  %v704_v8 = vadd.f32 %v2582_v16, %v703_v11 }
 0x19d   :  { %v998_v38 = vadd.f32 %v2587_v19, %v997_v32  ;;  %v2280_v50 = vpop.eup %2279 }
 0x19e   :  { %v1041_v54 = vmul.f32 %v2280_v50, %v2599_v60 }
 0x19f   :  { %766 = vadd.xlane.f32.xlu1 %v743_v17  ;;  %2281 = vtanh.f32 %v998_v38 }
 0x1a0   :  { %1322 = vadd.xlane.f32.xlu2 %v1300_v18  ;;  %1324 = vadd.xlane.f32.xlu0 %v1301_v20  ;;  %v1258_v47 = vpop.f32.mrf.mxu2  ;;  %2283 = vtanh.f32 %v702_v12 }
 0x1a1   :  { %v1259_v49 = vadd.f32 %v2606_v3, %v1258_v47  ;;  %2285 = vtanh.f32 %v1256_v46 }
 0x1a2   :  { %v1521_v52 = vpop.f32.mrf.mxu3 }
 0x1a3   :  { %2287 = vtanh.f32 %v1259_v49  ;;  %v706_v58 = vpop.f32.mrf.mxu0  ;;  %v1522_v63 = vadd.f32 %v2614_v13, %v1521_v52 }
 0x1a4   :  { %v1000_v57 = vpop.f32.mrf.mxu1  ;;  %2289 = vtanh.f32 %v1519_v56  ;;  %v707_v14 = vadd.f32 %v2582_v16, %v706_v58 }
 0x1a5   :  { %v2282_v51 = vpop.eup %2281  ;;  %v1001_v61 = vadd.f32 %v2587_v19, %v1000_v57 }
 0x1a6   :  { %v1042_v55 = vmul.f32 %v2282_v51, %v2599_v60  ;;  %v2284_v62 = vpop.eup %2283 }
 0x1a7   :  { %1065 = vadd.xlane.f32.xlu1 %v1040_v30  ;;  %v2286_v0 = vpop.eup %2285  ;;  %2291 = vtanh.f32 %v1001_v61  ;;  %v746_v4 = vmul.f32 %v2284_v62, %v2594_v59  ;;  %v2717_v30 = vand.u32 127, %v818_v21  ;;  %v2753_v21 = vstv %s1951_s22 }
 0x1a8   :  { %1585 = vadd.xlane.f32.xlu2 %v1563_v33  ;;  %1587 = vadd.xlane.f32.xlu0 %v1564_v34  ;;  %v1260_v2 = vpop.f32.mrf.mxu2  ;;  %2293 = vtanh.f32 %v1522_v63  ;;  %v1303_v6 = vmul.f32 %v2286_v0, %v2625_v26 }
 0x1a9   :  { %v2288_v1 = vpop.eup %2287  ;;  %v1261_v9 = vadd.f32 %v2606_v3, %v1260_v2  ;;  %2295 = vtanh.f32 %v704_v8  ;;  %v2725_v38 = vadd.s32 4294967288, %v2717_v30  ;;  %v2743_v63 = vadd.s32 4294967280, %v2717_v30 }
 0x1aa   :  { %v1523_v5 = vpop.f32.mrf.mxu3  ;;  %v1304_v7 = vmul.f32 %v2288_v1, %v2625_v26  ;;  %v2290_v10 = vpop.eup %2289 }
 0x1ab   :  { %v708_v17 = vpop.f32.mrf.mxu0  ;;  %2297 = vtanh.f32 %v1261_v9  ;;  %v1566_v27 = vmul.f32 %v2290_v10, %v2636_v40  ;;  %v1524_v29 = vadd.f32 %v2614_v13, %v1523_v5 }
 0x1ac   :  { %2299 = vtanh.f32 %v707_v14  ;;  %v1002_v22 = vpop.f32.mrf.mxu1 }
 0x1ad   :  { %v2292_v15 = vpop.eup %2291  ;;  %v1003_v33 = vadd.f32 %v2587_v19, %v1002_v22  ;;  %2301 = vtanh.f32 %v1524_v29  ;;  %v2760_v29 = vadd.s32 4294967272, %v2717_v30 }
 0x1ae   :  { %v2294_v20 = vpop.eup %2293  ;;  %v1043_v23 = vmul.f32 %v2292_v15, %v2599_v60 }
 0x1af   :  { %1326 = vadd.xlane.f32.xlu1 %v1302_v43  ;;  %v1567_v28 = vmul.f32 %v2294_v20, %v2636_v40  ;;  %v2296_v35 = vpop.eup %2295  ;;  %2303 = vtanh.f32 %v1003_v33 }
 0x1b0   :  { %768 = vadd.xlane.f32.xlu2 %v744_v44  ;;  %770 = vadd.xlane.f32.xlu0 %v745_v45  ;;  %v1263_v24 = vpop.f32.mrf.mxu2  ;;  %v747_v51 = vmul.f32 %v2296_v35, %v2594_v59 }
 0x1b1   :  { %v2298_v39 = vpop.eup %2297  ;;  %v1264_v56 = vadd.f32 %v2606_v3, %v1263_v24 }
 0x1b2   :  { %v1526_v34 = vpop.f32.mrf.mxu3  ;;  %v2300_v43 = vpop.eup %2299  ;;  %v1305_v48 = vmul.f32 %v2298_v39, %v2625_v26 }
 0x1b3   :  { %v1527_v36 = vadd.f32 %v2614_v13, %v1526_v34  ;;  %v711_v45 = vpop.f32.mrf.mxu0  ;;  %v748_v52 = vmul.f32 %v2300_v43, %v2594_v59  ;;  %v2302_v61 = vpop.eup %2301 }
 0x1b4   :  { %v1568_v10 = vmul.f32 %v2302_v61, %v2636_v40  ;;  %v712_v20 = vadd.f32 %v2582_v16, %v711_v45 }
 0x1b5   :  { %2305 = vtanh.f32 %v1527_v36  ;;  %v2304_v0 = vpop.eup %2303 }
 0x1b7   :  { %1589 = vadd.xlane.f32.xlu1 %v1565_v53  ;;  %v709_v53 = vadd.f32 %v2582_v16, %v708_v17  ;;  %v1044_v17 = vmul.f32 %v2304_v0, %v2599_v60 }
 0x1b8   :  { %1067 = vadd.xlane.f32.xlu2 %v1041_v54  ;;  %1069 = vadd.xlane.f32.xlu0 %v1042_v55  ;;  %v1005_v55 = vpop.f32.mrf.mxu1  ;;  %v1265_v57 = vpop.f32.mrf.mxu2 }
 0x1b9   :  { %v1006_v62 = vadd.f32 %v2587_v19, %v1005_v55  ;;  %2307 = vtanh.f32 %v709_v53 }
 0x1ba   :  { %2309 = vtanh.f32 %v1264_v56 }
 0x1bb   :  { %v2306_v2 = vpop.eup %2305  ;;  %2311 = vtanh.f32 %v1006_v62  ;;  %v713_v14 = vpop.f32.mrf.mxu0 }
 0x1bc   :  { %2313 = vtanh.f32 %v712_v20 }
 0x1bf   :  { %772 = vadd.xlane.f32.xlu1 %v746_v4 }
 0x1c0   :  { %1328 = vadd.xlane.f32.xlu2 %v1303_v6  ;;  %1330 = vadd.xlane.f32.xlu0 %v1304_v7  ;;  %v1528_v7 = vpop.f32.mrf.mxu3  ;;  %v1268_v33 = vpop.f32.mrf.mxu2 }
 0x1c2   :  { %v753_v18 = vpop.xlane.xlu0 %752 }
 0x1c3   :  { %v1048_v32 = vpop.xlane.xlu1 %1047  ;;  %v786_v37 = vadd.f32 %v2712_v25, %v753_v18  ;;  %v1569_v18 = vmul.f32 %v2306_v2, %v2636_v40 }
 0x1c4   :  { %v1081_v41 = vadd.f32 %v2719_v31, %v1048_v32 }
 0x1c5   :  { %v820_v46 = vperm.slane %v786_v37, %v2717_v30 }
 0x1c6   :  { %v1113_v49 = vperm.slane %v1081_v41, %v2717_v30 }
 0x1c7   :  { %1071 = vadd.xlane.f32.xlu1 %v1043_v23  ;;  %v1266_v23 = vadd.f32 %v2606_v3, %v1265_v57  ;;  %v2780_v57 = vadd.s32 4294967264, %v2717_v30 }
 0x1c8   :  { %1591 = vadd.xlane.f32.xlu2 %v1566_v27  ;;  %1593 = vadd.xlane.f32.xlu0 %v1567_v28  ;;  %v2308_v27 = vpop.eup %2307  ;;  %v714_v28 = vadd.f32 %v2582_v16, %v713_v14  ;;  %v1007_v16 = vpop.f32.mrf.mxu1 }
 0x1c9   :  { %v2310_v32 = vpop.eup %2309  ;;  %2315 = vtanh.f32 %v1266_v23 }
 0x1ca   :  { %v755_v42 = vpop.xlane.xlu0 %754  ;;  %v2312_v36 = vpop.eup %2311  ;;  %2317 = vtanh.f32 %v714_v28 }
 0x1cb   :  { %v1050_v11 = vpop.xlane.xlu2 %1049  ;;  %v787_v44 = vadd.f32 %v2712_v25, %v755_v42  ;;  %v1531_v42 = vpop.f32.mrf.mxu3 }
 0x1cc   :  { %v1082_v12 = vadd.f32 %v2719_v31, %v1050_v11  ;;  %v2314_v53 = vpop.eup %2313 }
 0x1cd   :  { %v822_v47 = vperm.slane %v787_v44, %v2725_v38  ;;  %v749_v44 = vmul.f32 %v2308_v27, %v2594_v59 }
 0x1ce   :  { %v1114_v50 = vperm.slane %v1082_v12, %v2725_v38 }
 0x1cf   :  { %v824_v54 = vsel %vm823_vm0, %v822_v47, %v820_v46  ;;  %1332 = vadd.xlane.f32.xlu1 %v1305_v48  ;;  %v1306_v46 = vmul.f32 %v2310_v32, %v2625_v26  ;;  %v1045_v47 = vmul.f32 %v2312_v36, %v2599_v60  ;;  %v1529_v48 = vadd.f32 %v2614_v13, %v1528_v7  ;;  %v2316_v55 = vpop.eup %2315 }
 0x1d0   :  { %v1115_v58 = vsel %vm823_vm0, %v1114_v50, %v1113_v49  ;;  %774 = vadd.xlane.f32.xlu2 %v747_v51  ;;  %776 = vadd.xlane.f32.xlu0 %v748_v52  ;;  %v2772_v49 = vstv %s1986_s23  ;;  %v1008_v51 = vadd.f32 %v2587_v19, %v1007_v16  ;;  %v2318_v61 = vpop.eup %2317  ;;  %v1307_v7 = vmul.f32 %v2316_v55, %v2625_v26 }
 0x1d1   :  { %2319 = vtanh.f32 %v1529_v48 }
 0x1d2   :  { %v757_v1 = vpop.xlane.xlu1 %756  ;;  %2321 = vtanh.f32 %v1008_v51 }
 0x1d3   :  { %v1311_v4 = vpop.xlane.xlu2 %1310  ;;  %v788_v5 = vadd.f32 %v2712_v25, %v757_v1  ;;  %v1052_v6 = vpop.xlane.xlu0 %1051 }
 0x1d4   :  { %v1083_v8 = vadd.f32 %v2719_v31, %v1052_v6  ;;  %v1344_v34 = vadd.f32 %v2753_v21, %v1311_v4  ;;  %v750_v4 = vmul.f32 %v2314_v53, %v2594_v59 }
 0x1d5   :  { %v826_v9 = vperm.slane %v788_v5, %v2743_v63  ;;  %v1270_v5 = vpop.f32.mrf.mxu2 }
 0x1d6   :  { %v1116_v15 = vperm.slane %v1083_v8, %v2743_v63  ;;  %v1376_v45 = vperm.slane %v1344_v34, %v2717_v30  ;;  %v1271_v20 = vadd.f32 %v2606_v3, %v1270_v5 }
 0x1d7   :  { %v828_v22 = vsel %vm827_vm1, %v826_v9, %v824_v54  ;;  %1595 = vadd.xlane.f32.xlu1 %v1568_v10  ;;  %v1269_v54 = vadd.f32 %v2606_v3, %v1268_v33  ;;  %v1533_v9 = vpop.f32.mrf.mxu3  ;;  %v2320_v27 = vpop.eup %2319 }
 0x1d8   :  { %v1117_v24 = vsel %vm827_vm1, %v1116_v15, %v1115_v58  ;;  %1073 = vadd.xlane.f32.xlu2 %v1044_v17  ;;  %1597 = vadd.xlane.f32.xlu0 %v1569_v18  ;;  %v751_v15 = vmul.f32 %v2318_v61, %v2594_v59  ;;  %v1532_v17 = vadd.f32 %v2614_v13, %v1531_v42  ;;  %v2801_v59 = vadd.s32 4294967256, %v2717_v30 }
 0x1d9   :  { %2323 = vtanh.f32 %v1269_v54  ;;  %v1534_v28 = vadd.f32 %v2614_v13, %v1533_v9  ;;  %v1570_v13 = vmul.f32 %v2320_v27, %v2636_v40 }
 0x1da   :  { %v759_v35 = vpop.xlane.xlu1 %758  ;;  %2325 = vtanh.f32 %v1532_v17 }
 0x1db   :  { %v1574_v37 = vpop.xlane.xlu2 %1573  ;;  %v789_v39 = vadd.f32 %v2712_v25, %v759_v35  ;;  %v1313_v41 = vpop.xlane.xlu0 %1312  ;;  %2327 = vtanh.f32 %v1271_v20 }
 0x1dc   :  { %v1345_v43 = vadd.f32 %v2753_v21, %v1313_v41  ;;  %v1607_v56 = vadd.f32 %v2772_v49, %v1574_v37  ;;  %2329 = vtanh.f32 %v1534_v28 }
 0x1dd   :  { %v830_v11 = vperm.slane %v789_v39, %v2760_v29 }
 0x1de   :  { %v1377_v12 = vperm.slane %v1345_v43, %v2725_v38  ;;  %v1639_v8 = vperm.slane %v1607_v56, %v2717_v30 }
 0x1df   :  { %v832_v50 = vsel %vm831_vm2, %v830_v11, %v828_v22  ;;  %778 = vadd.xlane.f32.xlu1 %v749_v44 }
 0x1e0   :  { %v1378_v52 = vsel %vm823_vm0, %v1377_v12, %v1376_v45  ;;  %1334 = vadd.xlane.f32.xlu2 %v1306_v46  ;;  %1075 = vadd.xlane.f32.xlu0 %v1045_v47 }
 0x1e2   :  { %v1054_v58 = vpop.xlane.xlu1 %1053 }
 0x1e3   :  { %v761_v62 = vpop.xlane.xlu2 %760  ;;  %v1084_v0 = vadd.f32 %v2719_v31, %v1054_v58  ;;  %v1576_v19 = vpop.xlane.xlu0 %1575 }
 0x1e4   :  { %v790_v1 = vadd.f32 %v2712_v25, %v761_v62  ;;  %v1608_v2 = vadd.f32 %v2772_v49, %v1576_v19 }
 0x1e5   :  { %v1118_v6 = vperm.slane %v1084_v0, %v2760_v29 }
 0x1e6   :  { %v834_v10 = vperm.slane %v790_v1, %v2780_v57  ;;  %v1640_v14 = vperm.slane %v1608_v2, %v2725_v38  ;;  %v2322_v38 = vpop.eup %2321 }
 0x1e7   :  { %v1119_v18 = vsel %vm831_vm2, %v1118_v6, %v1117_v24  ;;  %1336 = vadd.xlane.f32.xlu1 %v1307_v7  ;;  %v2324_v33 = vpop.eup %2323  ;;  %v1046_v39 = vmul.f32 %v2322_v38, %v2599_v60 }
 0x1e8   :  { %v2796_v22 = vsel %vm835_vm3, %v834_v10, %v832_v50  ;;  %v1641_v23 = vsel %vm823_vm0, %v1640_v14, %v1639_v8  ;;  %780 = vadd.xlane.f32.xlu2 %v750_v4  ;;  %782 = vadd.xlane.f32.xlu0 %v751_v15  ;;  %v1308_v43 = vmul.f32 %v2324_v33, %v2625_v26  ;;  %v2326_v44 = vpop.eup %2325 }
 0x1e9   :  { %v2328_v12 = vpop.eup %2327  ;;  %v1571_v54 = vmul.f32 %v2326_v44, %v2636_v40 }
 0x1ea   :  { %v1315_v32 = vpop.xlane.xlu1 %1314  ;;  %v2330_v60 = vpop.eup %2329  ;;  %v1309_v58 = vmul.f32 %v2328_v12, %v2625_v26 }
 0x1eb   :  { %v1056_v24 = vpop.xlane.xlu2 %1055  ;;  %v1346_v3 = vadd.f32 %v2753_v21, %v1315_v32  ;;  %v1058_v34 = vpop.xlane.xlu0 %1057  ;;  %v1572_v61 = vmul.f32 %v2330_v60, %v2636_v40 }
 0x1ec   :  { %v1085_v35 = vadd.f32 %v2719_v31, %v1056_v24  ;;  %v1086_v36 = vadd.f32 %v2719_v31, %v1058_v34  ;;  %v845_v24 = vadd.s32 4294967240, %v2717_v30  ;;  %v2851_v34 = vadd.s32 4294967232, %v2717_v30 }
 0x1ed   :  { %v1379_v37 = vperm.slane %v1346_v3, %v2743_v63 }
 0x1ee   :  { %v1120_v41 = vperm.slane %v1085_v35, %v2780_v57  ;;  %v1122_v42 = vperm.slane %v1086_v36, %v2801_v59 }
 0x1ef   :  { %v1380_v16 = vsel %vm827_vm1, %v1379_v37, %v1378_v52  ;;  %1077 = vadd.xlane.f32.xlu1 %v1046_v39 }
 0x1f0   :  { %v1121_v11 = vsel %vm835_vm3, %v1120_v41, %v1119_v18  ;;  %1599 = vadd.xlane.f32.xlu2 %v1570_v13  ;;  %1338 = vadd.xlane.f32.xlu0 %v1308_v43 }
 0x1f1   :  { %v1123_v45 = vsel %vm839_vm4, %v1122_v42, %v1121_v11 }
 0x1f2   :  { %v1578_v46 = vpop.xlane.xlu1 %1577 }
 0x1f3   :  { %v1317_v47 = vpop.xlane.xlu2 %1316  ;;  %v1609_v48 = vadd.f32 %v2772_v49, %v1578_v46  ;;  %v1319_v50 = vpop.xlane.xlu0 %1318 }
 0x1f4   :  { %v1347_v51 = vadd.f32 %v2753_v21, %v1317_v47  ;;  %v1348_v53 = vadd.f32 %v2753_v21, %v1319_v50 }
 0x1f5   :  { %v1642_v52 = vperm.slane %v1609_v48, %v2743_v63  ;;  %v2828_v63 = vadd.s32 4294967248, %v2717_v30 }
 0x1f6   :  { %v1381_v55 = vperm.slane %v1347_v51, %v2760_v29  ;;  %v1383_v56 = vperm.slane %v1348_v53, %v2780_v57 }
 0x1f7   :  { %v1643_v62 = vsel %vm827_vm1, %v1642_v52, %v1641_v23  ;;  %1601 = vadd.xlane.f32.xlu1 %v1571_v54  ;;  %v2869_v54 = vadd.s32 4294967224, %v2717_v30 }
 0x1f8   :  { %v1382_v0 = vsel %vm831_vm2, %v1381_v55, %v1380_v16  ;;  %1340 = vadd.xlane.f32.xlu2 %v1309_v58  ;;  %1603 = vadd.xlane.f32.xlu0 %v1572_v61 }
 0x1f9   :  { %v1384_v19 = vsel %vm835_vm3, %v1383_v56, %v1382_v0 }
 0x1fa   :  { %v1060_v1 = vpop.xlane.xlu1 %1059 }
 0x1fb   :  { %v1580_v2 = vpop.xlane.xlu2 %1579  ;;  %v1087_v4 = vadd.f32 %v2719_v31, %v1060_v1  ;;  %v1582_v5 = vpop.xlane.xlu0 %1581 }
 0x1fc   :  { %v1610_v26 = vadd.f32 %v2772_v49, %v1580_v2  ;;  %v1611_v40 = vadd.f32 %v2772_v49, %v1582_v5 }
 0x1fd   :  { %v1124_v6 = vperm.slane %v1087_v4, %v2828_v63 }
 0x1fe   :  { %v1644_v7 = vperm.slane %v1610_v26, %v2760_v29  ;;  %v1646_v8 = vperm.slane %v1611_v40, %v2780_v57 }
 0x1ff   :  { %v1125_v9 = vsel %vm843_vm5, %v1124_v6, %v1123_v45 }
 0x200   :  { %v1645_v10 = vsel %vm831_vm2, %v1644_v7, %v1643_v62 }
 0x201   :  { %v1647_v14 = vsel %vm835_vm3, %v1646_v8, %v1645_v10 }
 0x202   :  { %v1321_v15 = vpop.xlane.xlu1 %1320 }
 0x203   :  { %v763_v17 = vpop.xlane.xlu2 %762  ;;  %v1349_v18 = vadd.f32 %v2753_v21, %v1321_v15  ;;  %v765_v20 = vpop.xlane.xlu0 %764 }
 0x204   :  { %v791_v23 = vadd.f32 %v2712_v25, %v763_v17  ;;  %v792_v27 = vadd.f32 %v2712_v25, %v765_v20 }
 0x205   :  { %v1385_v28 = vperm.slane %v1349_v18, %v2801_v59 }
 0x206   :  { %v838_v29 = vperm.slane %v791_v23, %v2801_v59  ;;  %v842_v57 = vperm.slane %v792_v27, %v2828_v63 }
 0x207   :  { %v1386_v38 = vsel %vm839_vm4, %v1385_v28, %v1384_v19 }
 0x208   :  { %v840_v32 = vsel %vm839_vm4, %v838_v29, %v2796_v22 }
 0x209   :  { %v844_v33 = vsel %vm843_vm5, %v842_v57, %v840_v32 }
 0x20a   :  { %v1584_v3 = vpop.xlane.xlu1 %1583 }
 0x20b   :  { %v1062_v35 = vpop.xlane.xlu2 %1061  ;;  %v1612_v36 = vadd.f32 %v2772_v49, %v1584_v3  ;;  %v1064_v37 = vpop.xlane.xlu0 %1063 }
 0x20c   :  { %v1088_v13 = vadd.f32 %v2719_v31, %v1062_v35  ;;  %v1089_v39 = vadd.f32 %v2719_v31, %v1064_v37 }
 0x20d   :  { %v1648_v41 = vperm.slane %v1612_v36, %v2801_v59 }
 0x20e   :  { %v1126_v22 = vperm.slane %v1088_v13, %v845_v24  ;;  %v1128_v42 = vperm.slane %v1089_v39, %v2851_v34 }
 0x20f   :  { %v1649_v43 = vsel %vm839_vm4, %v1648_v41, %v1647_v14 }
 0x210   :  { %v1127_v16 = vsel %vm847_vm6, %v1126_v22, %v1125_v9 }
 0x211   :  { %v1129_v11 = vsel %vm851_vm7, %v1128_v42, %v1127_v16  ;;  %v2904_v42 = vadd.s32 4294967216, %v2717_v30  ;;  %v2908_v16 = vadd.s32 4294967208, %v2717_v30 }
 0x212   :  { %v767_v44 = vpop.xlane.xlu1 %766 }
 0x213   :  { %v1323_v45 = vpop.xlane.xlu2 %1322  ;;  %v793_v12 = vadd.f32 %v2712_v25, %v767_v44  ;;  %v1325_v46 = vpop.xlane.xlu0 %1324 }
 0x214   :  { %v1350_v60 = vadd.f32 %v2753_v21, %v1323_v45  ;;  %v1351_v47 = vadd.f32 %v2753_v21, %v1325_v46 }
 0x215   :  { %v846_v59 = vperm.slane %v793_v12, %v845_v24 }
 0x216   :  { %v1387_v48 = vperm.slane %v1350_v60, %v2828_v63  ;;  %v1389_v50 = vperm.slane %v1351_v47, %v845_v24  ;;  %v2917_v47 = vadd.s32 4294967200, %v2717_v30 }
 0x217   :  { %v848_v51 = vsel %vm847_vm6, %v846_v59, %v844_v33 }
 0x218   :  { %v1388_v53 = vsel %vm843_vm5, %v1387_v48, %v1386_v38 }
 0x219   :  { %v1390_v52 = vsel %vm847_vm6, %v1389_v50, %v1388_v53 }
 0x21a   :  { %v1066_v55 = vpop.xlane.xlu1 %1065 }
 0x21b   :  { %v1586_v56 = vpop.xlane.xlu2 %1585  ;;  %v1090_v58 = vadd.f32 %v2719_v31, %v1066_v55  ;;  %v1588_v61 = vpop.xlane.xlu0 %1587 }
 0x21c   :  { %v1613_v62 = vadd.f32 %v2772_v49, %v1586_v56  ;;  %v1614_v0 = vadd.f32 %v2772_v49, %v1588_v61  ;;  %v2928_v56 = vadd.s32 4294967176, %v2717_v30 }
 0x21d   :  { %v1130_v19 = vperm.slane %v1090_v58, %v2869_v54 }
 0x21e   :  { %v1650_v1 = vperm.slane %v1613_v62, %v2828_v63  ;;  %v1652_v2 = vperm.slane %v1614_v0, %v845_v24  ;;  %v2934_v0 = vadd.s32 4294967184, %v2717_v30 }
 0x21f   :  { %v2877_v4 = vsel %vm855_vm8, %v1130_v19, %v1129_v11 }
 0x220   :  { %v1651_v5 = vsel %vm843_vm5, %v1650_v1, %v1649_v43 }
 0x221   :  { %v2881_v26 = vsel %vm847_vm6, %v1652_v2, %v1651_v5 }
 0x222   :  { %v1327_v40 = vpop.xlane.xlu1 %1326 }
 0x223   :  { %v769_v6 = vpop.xlane.xlu2 %768  ;;  %v1352_v7 = vadd.f32 %v2753_v21, %v1327_v40  ;;  %v771_v8 = vpop.xlane.xlu0 %770 }
 0x224   :  { %v794_v3 = vadd.f32 %v2712_v25, %v769_v6  ;;  %v795_v35 = vadd.f32 %v2712_v25, %v771_v8 }
 0x225   :  { %v1391_v9 = vperm.slane %v1352_v7, %v2851_v34 }
 0x226   :  { %v850_v36 = vperm.slane %v794_v3, %v2851_v34  ;;  %v854_v43 = vperm.slane %v795_v35, %v2869_v54 }
 0x227   :  { %v2886_v10 = vsel %vm851_vm7, %v1391_v9, %v1390_v52 }
 0x228   :  { %v852_v11 = vsel %vm851_vm7, %v850_v36, %v848_v51  ;;  %v2923_v51 = vadd.s32 4294967192, %v2717_v30 }
 0x229   :  { %v856_v59 = vsel %vm855_vm8, %v854_v43, %v852_v11 }
 0x22a   :  { %v1590_v63 = vpop.xlane.xlu1 %1589 }
 0x22b   :  { %v1068_v14 = vpop.xlane.xlu2 %1067  ;;  %v1070_v15 = vpop.xlane.xlu0 %1069  ;;  %v1615_v48 = vadd.f32 %v2772_v49, %v1590_v63 }
 0x22c   :  { %v1091_v12 = vadd.f32 %v2719_v31, %v1068_v14  ;;  %v1092_v50 = vadd.f32 %v2719_v31, %v1070_v15 }
 0x22d   :  { %v1654_v7 = vperm.slane %v1615_v48, %v2851_v34 }
 0x22e   :  { %v1132_v58 = vperm.slane %v1091_v12, %v2904_v42  ;;  %v1134_v8 = vperm.slane %v1092_v50, %v2908_v16 }
 0x232   :  { %v773_v17 = vpop.xlane.xlu1 %772 }
 0x233   :  { %v1329_v18 = vpop.xlane.xlu2 %1328  ;;  %v2888_v20 = vpop.xlane.xlu0 %1330  ;;  %v796_v37 = vadd.f32 %v2712_v25, %v773_v17  ;;  %v1133_v17 = vsel %vm859_vm9, %v1132_v58, %v2877_v4  ;;  %v1655_v4 = vsel %vm851_vm7, %v1654_v7, %v2881_v26 }
 0x235   :  { %v858_v44 = vperm.slane %v796_v37, %v2904_v42  ;;  %v1135_v37 = vsel %vm863_vm10, %v1134_v8, %v1133_v17 }
 0x237   :  { %v860_v53 = vsel %vm859_vm9, %v858_v44, %v856_v59 }
 0x23a   :  { %v1072_v23 = vpop.xlane.xlu1 %1071 }
 0x23b   :  { %v1592_v27 = vpop.xlane.xlu2 %1591  ;;  %v1594_v28 = vpop.xlane.xlu0 %1593  ;;  %v1093_v5 = vadd.f32 %v2719_v31, %v1072_v23 }
 0x23c   :  { %v1616_v2 = vadd.f32 %v2772_v49, %v1592_v27 }
 0x23d   :  { %v1136_v27 = vperm.slane %v1093_v5, %v2917_v47 }
 0x23e   :  { %v1656_v23 = vperm.slane %v1616_v2, %v2869_v54 }
 0x23f   :  { %v1137_v11 = vsel %vm867_vm11, %v1136_v27, %v1135_v37 }
 0x240   :  { %v1657_v26 = vsel %vm855_vm8, %v1656_v23, %v1655_v4 }
 0x242   :  { %v2890_v29 = vpop.xlane.xlu1 %1332 }
 0x243   :  { %v775_v57 = vpop.xlane.xlu2 %774  ;;  %v777_v38 = vpop.xlane.xlu0 %776  ;;  %v1355_v44 = vadd.f32 %v2753_v21, %v2890_v29 }
 0x244   :  { %v797_v39 = vadd.f32 %v2712_v25, %v775_v57  ;;  %v798_v45 = vadd.f32 %v2712_v25, %v777_v38  ;;  %v1617_v57 = vadd.f32 %v2772_v49, %v1594_v28 }
 0x246   :  { %v862_v46 = vperm.slane %v797_v39, %v2908_v16  ;;  %v866_v52 = vperm.slane %v798_v45, %v2917_v47 }
 0x248   :  { %v864_v61 = vsel %vm863_vm10, %v862_v46, %v860_v53 }
 0x249   :  { %v868_v30 = vsel %vm867_vm11, %v866_v52, %v864_v61 }
 0x24a   :  { %v2892_v32 = vpop.xlane.xlu1 %1595 }
 0x24b   :  { %v1074_v33 = vpop.xlane.xlu2 %1073  ;;  %v2894_v24 = vpop.xlane.xlu0 %1597 }
 0x24c   :  { %v1094_v9 = vadd.f32 %v2719_v31, %v1074_v33 }
 0x24e   :  { %v1138_v33 = vperm.slane %v1094_v9, %v2923_v51 }
 0x250   :  { %v1139_v45 = vsel %vm871_vm12, %v1138_v33, %v1137_v11 }
 0x252   :  { %v779_v13 = vpop.xlane.xlu1 %778 }
 0x253   :  { %v2901_v41 = vpop.xlane.xlu2 %1334  ;;  %v1076_v22 = vpop.xlane.xlu0 %1075  ;;  %v799_v60 = vadd.f32 %v2712_v25, %v779_v13  ;;  %v1354_v13 = vadd.f32 %v2753_v21, %v2888_v20 }
 0x254   :  { %v1095_v63 = vadd.f32 %v2719_v31, %v1076_v22  ;;  %v1356_v20 = vadd.f32 %v2753_v21, %v2901_v41  ;;  %v1397_v41 = vperm.slane %v1355_v44, %v2908_v16 }
 0x255   :  { %v870_v62 = vperm.slane %v799_v60, %v2923_v51  ;;  %v1395_v29 = vperm.slane %v1354_v13, %v2904_v42 }
 0x256   :  { %v1140_v35 = vperm.slane %v1095_v63, %v2934_v0 }
 0x257   :  { %v872_v34 = vsel %vm871_vm12, %v870_v62, %v868_v30 }
 0x258   :  { %v1141_v46 = vsel %vm875_vm14, %v1140_v35, %v1139_v45 }
 0x25a   :  { %v1337_v55 = vpop.xlane.xlu1 %1336 }
 0x25b   :  { %v781_v19 = vpop.xlane.xlu2 %780  ;;  %v783_v1 = vpop.xlane.xlu0 %782  ;;  %v1357_v60 = vadd.f32 %v2753_v21, %v1337_v55  ;;  %v1399_v55 = vperm.slane %v1356_v20, %v2917_v47 }
 0x25c   :  { %v800_v40 = vadd.f32 %v2712_v25, %v781_v19  ;;  %v801_v6 = vadd.f32 %v2712_v25, %v783_v1  ;;  %v1353_v25 = vadd.f32 %v2753_v21, %v1329_v18  ;;  %v1618_v18 = vadd.f32 %v2772_v49, %v2892_v32 }
 0x25d   :  { %v1658_v32 = vperm.slane %v1617_v57, %v2904_v42  ;;  %v1401_v42 = vperm.slane %v1357_v60, %v2923_v51 }
 0x25e   :  { %v874_v14 = vperm.slane %v800_v40, %v2934_v0  ;;  %v878_v15 = vperm.slane %v801_v6, %v2928_v56  ;;  %v1393_v28 = vperm.slane %v1353_v25, %v2869_v54  ;;  %v1619_v54 = vadd.f32 %v2772_v49, %v2894_v24 }
 0x25f   :  { %v1660_v12 = vperm.slane %v1618_v18, %v2908_v16  ;;  %v1659_v53 = vsel %vm859_vm9, %v1658_v32, %v1657_v26 }
 0x260   :  { %v876_v38 = vsel %vm875_vm14, %v874_v14, %v872_v34  ;;  %v1394_v24 = vsel %vm855_vm8, %v1393_v28, %v2886_v10  ;;  %v1662_v52 = vperm.slane %v1619_v54, %v2917_v47 }
 0x261   :  { %v880_v3 = vsel %vm879_vm13, %v878_v15, %v876_v38  ;;  %v1661_v58 = vsel %vm863_vm10, %v1660_v12, %v1659_v53  ;;  %v1396_v19 = vsel %vm859_vm9, %v1395_v29, %v1394_v24 }
 0x262   :  { %882 = vst [vmem:[#allocation9] sm:$0x1] %v880_v3  ;;  %v1078_v36 = vpop.xlane.xlu1 %1077  ;;  %v1398_v5 = vsel %vm863_vm10, %v1397_v41, %v1396_v19  ;;  %v1663_v6 = vsel %vm867_vm11, %v1662_v52, %v1661_v58 }
 0x263   :  { %v1600_v39 = vpop.xlane.xlu2 %1599  ;;  %v1096_v22 = vadd.f32 %v2719_v31, %v1078_v36  ;;  %v1339_v43 = vpop.xlane.xlu0 %1338  ;;  %v1400_v7 = vsel %vm867_vm11, %v1399_v55, %v1398_v5 }
 0x264   :  { %v1620_v59 = vadd.f32 %v2772_v49, %v1600_v39  ;;  %v1358_v50 = vadd.f32 %v2753_v21, %v1339_v43  ;;  %v1402_v8 = vsel %vm871_vm12, %v1401_v42, %v1400_v7 }
 0x265   :  { %v1142_v31 = vperm.slane %v1096_v22, %v2928_v56 }
 0x266   :  { %v1664_v61 = vperm.slane %v1620_v59, %v2923_v51  ;;  %v1403_v10 = vperm.slane %v1358_v50, %v2934_v0 }
 0x267   :  { %v1143_v48 = vsel %vm879_vm13, %v1142_v31, %v1141_v46 }
 0x268   :  { %1145 = vst [vmem:[#allocation9 + $0x1] sm:$0x1] %v1143_v48  ;;  %v1665_v9 = vsel %vm871_vm12, %v1664_v61, %v1663_v6  ;;  %v1404_v30 = vsel %vm875_vm14, %v1403_v10, %v1402_v8 }
 0x26a   :  { %v1602_v62 = vpop.xlane.xlu1 %1601 }
 0x26b   :  { %v1341_v1 = vpop.xlane.xlu2 %1340  ;;  %v1621_v16 = vadd.f32 %v2772_v49, %v1602_v62  ;;  %v1604_v2 = vpop.xlane.xlu0 %1603 }
 0x26c   :  { %v1359_v40 = vadd.f32 %v2753_v21, %v1341_v1  ;;  %v1622_v47 = vadd.f32 %v2772_v49, %v1604_v2 }
 0x26d   :  { %v1666_v51 = vperm.slane %v1621_v16, %v2934_v0 }
 0x26e   :  { %v1405_v21 = vperm.slane %v1359_v40, %v2928_v56  ;;  %v1668_v49 = vperm.slane %v1622_v47, %v2928_v56 }
 0x26f   :  { %v1667_v63 = vsel %vm875_vm14, %v1666_v51, %v1665_v9 }
 0x270   :  { %v1406_v0 = vsel %vm879_vm13, %v1405_v21, %v1404_v30  ;;  %v1669_v14 = vsel %vm879_vm13, %v1668_v49, %v1667_v63 }
 0x271   :  { %1408 = vst [vmem:[#allocation9 + $0x2] sm:$0x1] %v1406_v0 }
 0x272   :  { %1671 = vst [vmem:[#allocation9 + $0x3] sm:$0x1] %v1669_v14 }
 0x273   :  { %1682 = dma.vmem_to_hbm [thread:$0]  %s1678_s25, 64, %s1680_s28, [#allocation6]  }
 0x274   :  { %2421 = dma.done.wait [#allocation6], 64  }
 0x275   :  { %2422 = vsyncadd [#allocation6], 4294967232 }
 0x276   :  { %1687 = vsyncpa [#allocation5], 1 }
 0x277   :  { %1688 = vsyncpa [#allocation8], 1 }
 0x278   :  { %1689 = vsyncpa [#allocation6], 1 }

</bundles_post_ra>
